<compile_context>
chip_gen: v6e
topology: v6e:2x2x1
jax: 0.10.0
libtpu: 0.0.40
codegen_flags: <defaults>
</compile_context>

<pallas_src>
import numpy as np
import jax
import jax.numpy as jnp
from jax.experimental import pallas as pl
from jax.experimental.pallas import tpu as pltpu


# ----------------------------------------------------------------------------
# Fused kernel: emb_features (1x1 conv) + emb_cnn_code (avg-pool + Linear)
# ----------------------------------------------------------------------------
def _cnn_encoder_head_kernel(x6_ref, wf_ref, x7_ref, wc_ref, b_ref,
                             feat_ref, code_ref):
    bt = x6_ref.shape[0]          # images per grid step (static)
    hw = x7_ref.shape[1]          # 64 spatial positions of Mixed_7c
    c7 = x7_ref.shape[2]          # 2048
    nef = wc_ref.shape[1]

    # ---- emb_features: per-image (nef,768) @ (768, P6pad) -> (nef, P6pad) ----
    # Result is already NCHW-ordered and lane-dense (P6 padded to a multiple of 128),
    # so every store is a full unmasked vst and no transposes are needed anywhere.
    wf = wf_ref[...]
    for i in range(bt):           # static unroll over the Bt images in this block
        feat_ref[i] = jnp.dot(
            wf, x6_ref[i], preferred_element_type=jnp.float32
        ).astype(feat_ref.dtype)

    # ---- emb_cnn_code: stack Bt images along M, fold the 8x8 avg-pool in ----
    # x7_ref: (Bt, 64, 2048)  ->  (Bt*64, 2048) @ (2048, nef)  (f32 accumulation),
    # then per-image sublane sum over the 64 positions * 1/64 (== mean pool) + bias.
    x7 = x7_ref[...].reshape(bt * hw, c7)
    prod = jnp.dot(x7, wc_ref[...], preferred_element_type=jnp.float32)   # (Bt*64, nef)
    pooled = prod.reshape(bt, hw, nef).sum(axis=1, keepdims=True) * (1.0 / hw)  # (Bt,1,nef)
    code_ref[...] = (pooled + b_ref[...]).astype(code_ref.dtype)          # one merged store


# ----------------------------------------------------------------------------
# Wrapper
# ----------------------------------------------------------------------------
def _pick_block_b(B, max_bt=8):
    """Largest divisor of B that is <= max_bt while keeping >= 2 grid steps
    (so both v7x TensorCores get work and per-step overhead is amortized)."""
    best = 1
    for bt in range(1, min(max_bt, B) + 1):
        if B % bt == 0 and (B // bt) >= 2:
            best = bt
    return best


def _batch_dim_semantics():
    """v7x has 2 TensorCores; only CORE_PARALLEL actually shards the grid across
    them. Other generations keep plain 'parallel'."""
    try:
        kind = jax.devices()[0].device_kind.lower()
    except Exception:
        kind = ""
    if ("v7" in kind or "tpu7" in kind) and hasattr(pltpu, "CORE_PARALLEL"):
        return (pltpu.CORE_PARALLEL,)
    return ("parallel",)


def cnn_encoder_head(params, feat_6e, feat_7c, *, max_block_b=8,
                     compute_dtype=jnp.bfloat16):
    """feat_6e: (B, 768, 17, 17)  -- backbone output at Mixed_6e (`features = x`)
       feat_7c: (B, 2048, 8, 8)   -- backbone output at Mixed_7c
    Returns (features, cnn_code) exactly as CNN_ENCODER.forward does past the
    frozen backbone: features (B, nef, 17, 17), cnn_code (B, nef), both f32."""
    B, C6, H6, W6 = feat_6e.shape
    _, C7, H7, W7 = feat_7c.shape
    nef = params["w_feat"].shape[0]
    P6 = H6 * W6                         # 289
    P7 = H7 * W7                         # 64
    LANES = 128
    P6pad = ((P6 + LANES - 1) // LANES) * LANES   # 384: lane-dense feat stores

    Bt = _pick_block_b(B, max_block_b)
    grid = (B // Bt,)

    # Activations: bf16 cast (memory-bound kernel -> ~2x less HBM traffic).
    # x6 is zero-padded on the spatial axis to 384 (the extra output columns are
    # exactly zero and are sliced off after the call).  x7 is presented as
    # (B, 64, 2048) so the code matmul uses all 128 lanes and needs no in-kernel
    # transpose.  Both the cast and pad/transpose fuse into single XLA copies.
    x6 = jnp.pad(feat_6e.reshape(B, C6, P6).astype(compute_dtype),
                 ((0, 0), (0, 0), (0, P6pad - P6)))
    x7 = jnp.transpose(feat_7c.reshape(B, C7, P7), (0, 2, 1)).astype(compute_dtype)

    wf = params["w_feat"].astype(compute_dtype)       # (nef, 768)
    wc = params["w_code"].astype(compute_dtype)       # (2048, nef)
    b = params["b_code"].reshape(1, nef).astype(jnp.float32)

    itemsize = jnp.dtype(compute_dtype).itemsize
    flops = B * (2 * nef * C6 * P6 + 2 * P7 * C7 * nef)
    bytes_accessed = ((x6.size + x7.size + wf.size + wc.size) * itemsize
                      + b.size * 4
                      + (B * nef * P6pad + B * nef) * 4)

    out_feat, out_code = pl.pallas_call(
        _cnn_encoder_head_kernel,
        out_shape=(
            jax.ShapeDtypeStruct((B, nef, P6pad), jnp.float32),   # features (NC, HWpad)
            jax.ShapeDtypeStruct((B, 1, nef), jnp.float32),       # cnn_code rows
        ),
        grid=grid,
        in_specs=[
            pl.BlockSpec((Bt, C6, P6pad), lambda i: (i, 0, 0)),   # Mixed_6e block
            pl.BlockSpec((nef, C6), lambda i: (0, 0)),            # emb_features weight
            pl.BlockSpec((Bt, P7, C7), lambda i: (i, 0, 0)),      # Mixed_7c block
            pl.BlockSpec((C7, nef), lambda i: (0, 0)),            # emb_cnn_code weight
            pl.BlockSpec((1, nef), lambda i: (0, 0)),             # emb_cnn_code bias
        ],
        out_specs=(
            pl.BlockSpec((Bt, nef, P6pad), lambda i: (i, 0, 0)),
            pl.BlockSpec((Bt, 1, nef), lambda i: (i, 0, 0)),
        ),
        compiler_params=pltpu.CompilerParams(
            dimension_semantics=_batch_dim_semantics()),
        cost_estimate=pl.CostEstimate(
            flops=int(flops), transcendentals=0,
            bytes_accessed=int(bytes_accessed)),
    )(x6, wf, x7, wc, b)

    features = out_feat[:, :, :P6].reshape(B, nef, H6, W6)   # drop the lane pad
    cnn_code = out_code.reshape(B, nef)
    return features, cnn_code


# ----------------------------------------------------------------------------
# Parameters (kernel-native layouts) + pure-jnp reference
# ----------------------------------------------------------------------------
def init_params(key, nef):
    """Mirrors CNN_ENCODER.init_trainable_weights(): emb_features / emb_cnn_code
    weights ~ U(-0.1, 0.1); Linear bias keeps PyTorch's default U(-1/sqrt(fan_in)).
    Stored in kernel-native layouts (f32 masters; cast to bf16 at the call boundary):
      w_feat : (nef, 768)   == conv1x1 weight (nef, 768, 1, 1) squeezed
      w_code : (2048, nef)  == nn.Linear(2048, nef).weight transposed
      b_code : (nef,)
    """
    k1, k2, k3 = jax.random.split(key, 3)
    initrange = 0.1
    w_feat = jax.random.uniform(k1, (nef, 768), jnp.float32, -initrange, initrange)
    w_code = jax.random.uniform(k2, (2048, nef), jnp.float32, -initrange, initrange)
    bound = 1.0 / np.sqrt(2048.0)
    b_code = jax.random.uniform(k3, (nef,), jnp.float32, -bound, bound)
    return {"w_feat": w_feat, "w_code": w_code, "b_code": b_code}


def _reference(params, feat_6e, feat_7c, compute_dtype=jnp.bfloat16):
    """Same math as the PyTorch head, on the same bf16-quantized operands the
    kernel sees (accumulation in f32), so the comparison isolates kernel
    correctness from the deliberate bf16 cast."""
    wf = params["w_feat"].astype(compute_dtype).astype(jnp.float32)
    wc = params["w_code"].astype(compute_dtype).astype(jnp.float32)
    x6 = feat_6e.astype(compute_dtype).astype(jnp.float32)
    x7 = feat_7c.astype(compute_dtype).astype(jnp.float32)
    features = jnp.einsum("bchw,oc->bohw", x6, wf)
    pooled = jnp.mean(x7, axis=(2, 3))                         # (B, 2048)
    cnn_code = pooled @ wc + params["b_code"]                  # (B, nef)
    return features, cnn_code


if __name__ == "__main__":
    B, nef = 2, 128
    key = jax.random.PRNGKey(0)
    k_p, k_a, k_b = jax.random.split(key, 3)

    params = init_params(k_p, nef)
    # Synthetic intermediate backbone activations (Inception-v3 shapes, small batch).
    feat_6e = jax.random.normal(k_a, (B, 768, 17, 17), jnp.float32)
    feat_7c = jax.random.normal(k_b, (B, 2048, 8, 8), jnp.float32)

    features, cnn_code = cnn_encoder_head(params, feat_6e, feat_7c)
    features = jax.block_until_ready(features)
    cnn_code = jax.block_until_ready(cnn_code)

    ref_feat, ref_code = _reference(params, feat_6e, feat_7c)
    # Tolerance absorbs accumulation-order differences (MXU vs XLA, pool<->matmul
    # reordering); the bf16 input quantization is identical on both sides.
    np.testing.assert_allclose(np.asarray(features), np.asarray(ref_feat),
                               rtol=1e-2, atol=1e-2)
    np.testing.assert_allclose(np.asarray(cnn_code), np.asarray(ref_code),
                               rtol=1e-2, atol=1e-2)

    assert features.shape == (B, nef, 17, 17)
    assert cnn_code.shape == (B, nef)
    print("KERNEL_OK")
</pallas_src>

<mosaic_0001>
module attributes {stable_mosaic.version = 11 : i64} {
  func.func @_cnn_encoder_head_kernel(%arg0: i32, %arg1: memref<1x768x384xbf16, #tpu.memory_space<vmem>>, %arg2: memref<128x768xbf16, #tpu.memory_space<vmem>>, %arg3: memref<1x64x2048xbf16, #tpu.memory_space<vmem>>, %arg4: memref<2048x128xbf16, #tpu.memory_space<vmem>>, %arg5: memref<1x128xf32, #tpu.memory_space<vmem>>, %arg6: memref<1x128x384xf32, #tpu.memory_space<vmem>>, %arg7: memref<1x1x128xf32, #tpu.memory_space<vmem>>) attributes {dimension_semantics = [#tpu.dimension_semantics<parallel>], iteration_bounds = array<i64: 2>, scalar_prefetch = 0 : i64, scratch_operands = 0 : i64, tpu.core_type = #tpu.core_type<tc>, window_params = [{transform_indices = @transform_0, window_bounds = array<i64: 1, 768, 384>}, {pipeline_mode = #tpu.pipeline_mode<synchronous>, transform_indices = @transform_1, window_bounds = array<i64: 128, 768>}, {transform_indices = @transform_2, window_bounds = array<i64: 1, 64, 2048>}, {pipeline_mode = #tpu.pipeline_mode<synchronous>, transform_indices = @transform_3, window_bounds = array<i64: 2048, 128>}, {pipeline_mode = #tpu.pipeline_mode<synchronous>, transform_indices = @transform_4, window_bounds = array<i64: 1, 128>}, {transform_indices = @transform_5, window_bounds = array<i64: 1, 128, 384>}, {transform_indices = @transform_6, window_bounds = array<i64: 1, 1, 128>}]} {
    %c0 = arith.constant 0 : index
    %c0_0 = arith.constant 0 : index
    %0 = vector.load %arg2[%c0, %c0_0] : memref<128x768xbf16, #tpu.memory_space<vmem>>, vector<128x768xbf16>
    %c0_1 = arith.constant 0 : index
    %c0_2 = arith.constant 0 : index
    %c0_3 = arith.constant 0 : index
    %1 = vector.load %arg1[%c0_1, %c0_2, %c0_3] : memref<1x768x384xbf16, #tpu.memory_space<vmem>>, vector<1x768x384xbf16>
    %2 = vector.shape_cast %1 : vector<1x768x384xbf16> to vector<768x384xbf16>
    %cst = arith.constant dense<0.000000e+00> : vector<128x384xf32>
    %3 = tpu.matmul %0, %2, %cst {dimension_numbers = #tpu.dot_dimension_numbers<[1], [0], [0], [1], [0, 0, 1, 1], [], []>} : vector<128x768xbf16>, vector<768x384xbf16>, vector<128x384xf32> -> vector<128x384xf32>
    %c0_4 = arith.constant 0 : index
    %c0_5 = arith.constant 0 : index
    %c0_6 = arith.constant 0 : index
    %4 = vector.load %arg6[%c0_4, %c0_5, %c0_6] : memref<1x128x384xf32, #tpu.memory_space<vmem>>, vector<1x128x384xf32>
    %5 = vector.shape_cast %4 : vector<1x128x384xf32> to vector<128x384xf32>
    %6 = vector.shape_cast %3 : vector<128x384xf32> to vector<1x128x384xf32>
    tpu.vector_store %arg6[%c0_4, %c0_5, %c0_6], %6 {strides = array<i32>} : memref<1x128x384xf32, #tpu.memory_space<vmem>>, vector<1x128x384xf32>,
    %c0_7 = arith.constant 0 : index
    %c0_8 = arith.constant 0 : index
    %c0_9 = arith.constant 0 : index
    %7 = vector.load %arg3[%c0_7, %c0_8, %c0_9] : memref<1x64x2048xbf16, #tpu.memory_space<vmem>>, vector<1x64x2048xbf16>
    %8 = vector.shape_cast %7 : vector<1x64x2048xbf16> to vector<64x2048xbf16>
    %c0_10 = arith.constant 0 : index
    %c0_11 = arith.constant 0 : index
    %9 = vector.load %arg4[%c0_10, %c0_11] : memref<2048x128xbf16, #tpu.memory_space<vmem>>, vector<2048x128xbf16>
    %cst_12 = arith.constant dense<0.000000e+00> : vector<64x128xf32>
    %10 = tpu.matmul %8, %9, %cst_12 {dimension_numbers = #tpu.dot_dimension_numbers<[1], [0], [0], [1], [0, 0, 1, 1], [], []>} : vector<64x2048xbf16>, vector<2048x128xbf16>, vector<64x128xf32> -> vector<64x128xf32>
    %11 = vector.shape_cast %10 : vector<64x128xf32> to vector<1x64x128xf32>
    %cst_13 = arith.constant dense<0.000000e+00> : vector<1x128xf32>
    %12 = vector.multi_reduction <add>, %11, %cst_13 [1] : vector<1x64x128xf32> to vector<1x128xf32>
    %13 = vector.shape_cast %12 : vector<1x128xf32> to vector<1x1x128xf32>
    %cst_14 = arith.constant 1.562500e-02 : f32
    %14 = vector.broadcast %cst_14 : f32 to vector<1x1x128xf32>
    %15 = arith.mulf %13, %14 : vector<1x1x128xf32>
    %c0_15 = arith.constant 0 : index
    %c0_16 = arith.constant 0 : index
    %16 = vector.load %arg5[%c0_15, %c0_16] : memref<1x128xf32, #tpu.memory_space<vmem>>, vector<1x128xf32>
    %17 = vector.shape_cast %16 : vector<1x128xf32> to vector<1x1x128xf32>
    %18 = arith.addf %15, %17 : vector<1x1x128xf32>
    %c0_17 = arith.constant 0 : index
    %c0_18 = arith.constant 0 : index
    %c0_19 = arith.constant 0 : index
    %19 = vector.load %arg7[%c0_17, %c0_18, %c0_19] : memref<1x1x128xf32, #tpu.memory_space<vmem>>, vector<1x1x128xf32>
    tpu.vector_store %arg7[%c0_17, %c0_18, %c0_19], %18 {strides = array<i32>} : memref<1x1x128xf32, #tpu.memory_space<vmem>>, vector<1x1x128xf32>,
    return
  }
  func.func @transform_0(%arg0: i32) -> (i32, i32, i32) {
    %c0_i32 = arith.constant 0 : i32
    %c0_i32_0 = arith.constant 0 : i32
    %c0_i32_1 = arith.constant 0 : i32
    return %arg0, %c0_i32, %c0_i32_0 : i32, i32, i32
  }
  func.func @transform_1(%arg0: i32) -> (i32, i32) {
    %c0_i32 = arith.constant 0 : i32
    %c0_i32_0 = arith.constant 0 : i32
    %c0_i32_1 = arith.constant 0 : i32
    return %c0_i32, %c0_i32_0 : i32, i32
  }
  func.func @transform_2(%arg0: i32) -> (i32, i32, i32) {
    %c0_i32 = arith.constant 0 : i32
    %c0_i32_0 = arith.constant 0 : i32
    %c0_i32_1 = arith.constant 0 : i32
    return %arg0, %c0_i32, %c0_i32_0 : i32, i32, i32
  }
  func.func @transform_3(%arg0: i32) -> (i32, i32) {
    %c0_i32 = arith.constant 0 : i32
    %c0_i32_0 = arith.constant 0 : i32
    %c0_i32_1 = arith.constant 0 : i32
    return %c0_i32, %c0_i32_0 : i32, i32
  }
  func.func @transform_4(%arg0: i32) -> (i32, i32) {
    %c0_i32 = arith.constant 0 : i32
    %c0_i32_0 = arith.constant 0 : i32
    %c0_i32_1 = arith.constant 0 : i32
    return %c0_i32, %c0_i32_0 : i32, i32
  }
  func.func @transform_5(%arg0: i32) -> (i32, i32, i32) {
    %c0_i32 = arith.constant 0 : i32
    %c0_i32_0 = arith.constant 0 : i32
    %c0_i32_1 = arith.constant 0 : i32
    return %arg0, %c0_i32, %c0_i32_0 : i32, i32, i32
  }
  func.func @transform_6(%arg0: i32) -> (i32, i32, i32) {
    %c0_i32 = arith.constant 0 : i32
    %c0_i32_0 = arith.constant 0 : i32
    %c0_i32_1 = arith.constant 0 : i32
    return %arg0, %c0_i32, %c0_i32_0 : i32, i32, i32
  }
}

</mosaic_0001>

<bundles_post_ra>
// kernel: tpu_custom_call.1
= control target key start
LH: loop header
LB: loop body
LE: loop exit
PB: predicated region body
PF: predicated region fallthrough
CT: control target
= control target key end

     0   :  { %s7298_s0 = inlined_call_operand.hbm [shape: bf16[2,768,384], index: 0, kind: input, shape index: {}]   ;;  %s7299_s1 = inlined_call_operand.hbm [shape: bf16[128,768], index: 1, kind: input, shape index: {}]   ;;  %s7300_s2 = inlined_call_operand.hbm [shape: bf16[2,64,2048], index: 2, kind: input, shape index: {}]   ;;  %s7301_s3 = inlined_call_operand.hbm [shape: bf16[2048,128], index: 3, kind: input, shape index: {}]   ;;  %s7302_s4 = inlined_call_operand.hbm [shape: f32[1,128], index: 4, kind: input, shape index: {}]   ;;  %s7303_s5 = inlined_call_operand.hbm [shape: f32[2,128,384], index: 5, kind: output, shape index: {0}]   ;;  %s7304_s6 = inlined_call_operand.hbm [shape: f32[2,1,128], index: 6, kind: output, shape index: {1}]  }
   0x1   :  { %7314 = sst [smem:[#allocation45_spill]] %s7298_s0 }
   0x2   :  { %7315 = sst [smem:[#allocation46_spill]] %s7299_s1 }
   0x3   :  { %12 = vsyncpa [#allocation3], 0 }
   0x4   :  { %14 = vsyncpa [#allocation3 + $0x1], 0 }
   0x5   :  { %15 = vsyncpa [#allocation6], 0 }
   0x6   :  { %16 = vsyncpa [#allocation10], 0 }
   0x7   :  { %17 = vsyncpa [#allocation4], 0 }
   0x8   :  { %19 = vsyncpa [#allocation4 + $0x1], 0 }
   0x9   :  { %20 = vsyncpa [#allocation13], 0 }
   0xa   :  { %22 = vsyncpa [#allocation13 + $0x1], 0  ;;  %s6122_s21 = smov 0   ;;  %s6124_s22 = smov 0  }
   0xb   :  { %s6126_s23 = smov 0   ;;  %s6128_s24 = smov 0  }
   0xc LB: > { %7316 = sst [smem:[#allocation21_spill]] %s6065_s23  ;;  %s6143_s25 = sadd.s32 4294967295, %s6069_s24   ;;  %s6069_s24 = sphi %s6128_s24, %s7394_s24   ;;  %s6065_s23 = sphi %s6126_s23, %s7399_s23   ;;  %s6061_s22 = sphi %s6124_s22, %s7398_s22   ;;  %s6057_s21 = sphi %s6122_s21, %s7397_s21  }
   0xd   : > { %s4412_s26 = sadd.s32 4294967294, %s6069_s24   ;;  %p48_p0 = scmp.ne.s32.totalorder %s6061_s22, %s6057_s21 }
   0xe   : > { %p7305_p1 = scmp.eq.s32.totalorder %s6143_s25, 0  ;;  %p161_p2 = scmp.eq.s32.totalorder %s6143_s25, 1 }
   0xf   : > { %p167_p3 = scmp.eq.s32.totalorder %s4412_s26, 1  ;;  %p4413_p5 = scmp.ge.s32.totalorder %s6069_s24, 1 }
  0x10   : > { %p6152_p4 = por %p7305_p1, %p48_p0  ;;  %p200_p7 = scmp.lt.s32.totalorder %s6069_s24, 3 }
  0x11   : > { %p6157_p6 = por %p167_p3, %p48_p0  ;;  %s6071_s30 = smov [#allocation5]  }
  0x12   : > { %s7317_s27 = scalar_select %p6152_p4, 1, 0 }
  0x13   : > { %s7318_s28 = scalar_select %p6157_p6, 1, 0 }
  0x14   : > { %p6162_p8 = pnand %p4413_p5, %p200_p7  ;;  %s212_s7 = sshll.u32 %s6071_s30, 4  ;;  %s213_s7 = int_to_ptr.vmem [resolvable:$true] %s212_s7 }
  0x15   : > { %7319 = sst [smem:[#allocation22_spill]] %s7318_s28  ;;  %s6176_s9 = sadd.s32 1, %s6069_s24  }
  0x16   : > { %s7320_s29 = scalar_select %p6162_p8, 1, 0 }
  0x17   : > { %p5353_p9 = pneg %p6162_p8  ;;  %7322 = sst [smem:[#allocation23_spill]] %s6176_s9 }
  0x18   : > { %s35_s10 = sadd.s32 1, %s6065_s23  ;;  %s32_s11 = ssub.s32 %s6069_s24, %s6176_s9 }
  0x19   : > { %p6171_p11 = pnand %p5353_p9, %p7305_p1  ;;  %s5836_s12 = scalar_lea.vmem %s213_s7, 6144 }
  0x1a   : > { %p5837_p13 = scmp.ne.s32.totalorder %s213_s7, %s5836_s12  ;;  %p5844_p5 = scmp.lt.s32.totalorder %s213_s7, %s213_s7 }
  0x1b   : > { %p7306_p12 = pneg %p6171_p11  ;;  %p5845_p7 = scmp.lt.s32.totalorder %s5836_s12, %s5836_s12 }
  0x1d   : > { %p5839_p0 = pnand %p5837_p13, %p7306_p12  ;;  %p5846_p9 = por %p5845_p7, %p5844_p5 }
  0x1f   : > { %p5840_p3 = pneg %p5839_p0 }
  0x21   : > { %p5847_p10 = pnand %p5846_p9, %p5840_p3 }
  0x23   : > { %5850 = shalt.err (!%p5847_p10)
}
  0x24   : > { %s6072_s13 = smov 384   ;;  %s6073_s14 = smov 24  }
  0x25   : > { %s7323_s1 = sld [smem:[#allocation46_spill]]  ;;  %p33_p13 = scmp.eq.s32.totalorder %s32_s11, 0 }
  0x26   : > { %p42_p0 = scmp.ne.s32.totalorder %s6065_s23, %s6061_s22  ;;  %p43_p10 = scmp.eq.s32.totalorder %s6069_s24, 0 }
  0x27   : > { %p5380_p3 = scmp.lt.s32.totalorder %s6069_s24, 2  ;;  %s250_s19 = sand.u32 1, %s6069_s24  }
  0x28   : > { %s6196_s17 = scalar_select %p33_p13, %s6065_s23, %s35_s10  }
  0x29   : > { %p44_p5 = por %p43_p10, %p42_p0  ;;  %p6200_p7 = por %p161_p2, %p42_p0 }
  0x2a   : > { %7324 = sst [smem:[#allocation24_spill]] %s6196_s17  ;;  %s252_s20 = sand.u32 1, %s6065_s23  }
  0x2b   : > { %5356 = dma.hbm_to_vmem [thread:$0]  (!%p6171_p11), %s7323_s1, 6144, %s213_s7, [#allocation6], %s6072_s13, %s6072_s13, %s6073_s14  }
  0x2c   : > { %s7325_s18 = scalar_select %p6200_p7, 1, 0 }
  0x2d   : > { %s5328_s26 = smul.u32 1152, %s252_s20  ;;  %p6207_p9 = pnand %p5380_p3, %p44_p5 }
  0x2e   : > { %s5329_s30 = smul.u32 18432, %s6069_s24  ;;  %s7327_s0 = sld [smem:[#allocation45_spill]] }
  0x2f   : > { %s254_s13 = scalar_lea.vmem [#allocation2], %s5328_s26  ;;  %s6218_s15 = sshll.u32 %s252_s20, 9 }
  0x30   : > { %s261_s14 = sshll.u32 %s254_s13, 4  ;;  %s6220_s16 = scalar_lea.sflag [#allocation3], %s250_s19  ;;  %s6216_s14 = int_to_ptr.vmem [resolvable:$true] %s261_s14 }
  0x31   : > { %p5853_p13 = pneg %p6207_p9 }
  0x34   : > { %s6214_s10 = scalar_lea.hbm %s7327_s0, %s5329_s30  ;;  %s5856_s11 = scalar_lea.hbm %s7327_s0, 36864 }
  0x35   : > { %s5851_s1 = scalar_lea.hbm %s6214_s10, 18432  ;;  %p5857_p3 = scmp.lt.s32.totalorder %s6214_s10, %s7327_s0 }
  0x36   : > { %p5852_p2 = scmp.ne.s32.totalorder %s6214_s10, %s5851_s1  ;;  %p5858_p5 = scmp.lt.s32.totalorder %s5856_s11, %s5851_s1 }
  0x38   : > { %p5854_p0 = pnand %p5853_p13, %p5852_p2  ;;  %p5859_p1 = por %p5858_p5, %p5857_p3 }
  0x3a   : > { %p5855_p10 = pneg %p5854_p0 }
  0x3c   : > { %p5860_p12 = pnand %p5859_p1, %p5855_p10 }
  0x3e   : > { %5863 = shalt.err (!%p5860_p12)
}
  0x3f   : > { %s5864_s19 = scalar_lea.vmem %s6216_s14, 18432  ;;  %s6074_s20 = smov [#allocation2]  }
  0x40   : > { %p5865_p6 = scmp.ne.s32.totalorder %s6216_s14, %s5864_s19  ;;  %s5869_s30 = sshll.u32 %s6074_s20, 4  ;;  %s5870_s30 = int_to_ptr.vmem [resolvable:$false] %s5869_s30 }
  0x41   : > { %s5871_s7 = scalar_lea.vmem %s5870_s30, 36864  ;;  %p5872_p7 = scmp.lt.s32.totalorder %s6216_s14, %s5870_s30 }
  0x42   : > { %p5867_p2 = pnand %p5865_p6, %p5853_p13  ;;  %p5873_p4 = scmp.lt.s32.totalorder %s5871_s7, %s5864_s19 }
  0x44   : > { %p5868_p0 = pneg %p5867_p2  ;;  %p5874_p8 = por %p5873_p4, %p5872_p7 }
  0x46   : > { %p5875_p3 = pnand %p5874_p8, %p5868_p0 }
  0x48   : > { %5878 = shalt.err (!%p5875_p3)
}
  0x49   : > { %s6075_s1 = smov 192   ;;  %s6076_s11 = smov 12  }
  0x4a   : > { %5366 = dma.hbm_to_vmem [thread:$0]  (!%p6207_p9), %s6214_s10, 18432, %s6216_s14, %s6220_s16, %s6075_s1, %s6075_s1, %s6076_s11  }
  0x4b   : > { %s6077_s26 = smov [#allocation8]   ;;  %p7328_p6 = pneg %p6171_p11 }
  0x4c   : > { %s225_s13 = sshll.u32 %s6077_s26, 4  ;;  %s226_s13 = int_to_ptr.vmem [resolvable:$true] %s225_s13 }
  0x4d   : > { %s5890_s20 = scalar_lea.vmem %s226_s13, 16384  ;;  %p5898_p8 = scmp.lt.s32.totalorder %s226_s13, %s226_s13 }
  0x4e   : > { %p5891_p1 = scmp.ne.s32.totalorder %s226_s13, %s5890_s20  ;;  %p5899_p7 = scmp.lt.s32.totalorder %s5890_s20, %s5890_s20 }
  0x50   : > { %p5893_p12 = pnand %p5891_p1, %p7328_p6  ;;  %p5900_p10 = por %p5899_p7, %p5898_p8 }
  0x52   : > { %p5894_p4 = pneg %p5893_p12 }
  0x54   : > { %p5901_p5 = pnand %p5900_p10, %p5894_p4 }
  0x56   : > { %5904 = shalt.err (!%p5901_p5)
}
  0x57   : > { %s6078_s19 = smov 64   ;;  %s6079_s10 = smov 4  }
  0x58   : > { %5359 = dma.hbm_to_vmem [thread:$0]  (!%p6171_p11), %s7301_s3, 16384, %s226_s13, [#allocation6], %s6078_s19, %s6078_s19, %s6079_s10  }
  0x59   : > { %s4815_s7 = sshll.u32 %s6069_s24, 13  ;;  %s6080_s1 = smov [#allocation9]  }
  0x5a   : > { %s239_s11 = sshll.u32 %s6080_s1, 4  ;;  %s6261_s0 = scalar_lea.hbm %s7300_s2, %s4815_s7  ;;  %s240_s11 = int_to_ptr.vmem [resolvable:$true] %s239_s11 }
  0x5b   : > { %s275_s17 = scalar_lea.vmem [#allocation7], %s6218_s15  ;;  %s5916_s9 = scalar_lea.vmem %s240_s11, 16 }
  0x5c   : > { %s282_s23 = sshll.u32 %s275_s17, 4  ;;  %p5917_p2 = scmp.ne.s32.totalorder %s240_s11, %s5916_s9  ;;  %s6272_s23 = int_to_ptr.vmem [resolvable:$true] %s282_s23 }
  0x5d   : > { %p7329_p0 = pmov %p7328_p6  ;;  %s5923_s28 = scalar_lea.vmem %s240_s11, 32 }
  0x5e   : > { %p5924_p6 = scmp.lt.s32.totalorder %s240_s11, %s240_s11  ;;  %p5925_p12 = scmp.lt.s32.totalorder %s5923_s28, %s5916_s9 }
  0x5f   : > { %p5919_p3 = pnand %p5917_p2, %p7329_p0 }
  0x60   : > { %p5926_p4 = por %p5925_p12, %p5924_p6 }
  0x61   : > { %p5920_p1 = pneg %p5919_p3 }
  0x63   : > { %p5927_p8 = pnand %p5926_p4, %p5920_p1 }
  0x65   : > { %5930 = shalt.err (!%p5927_p8)
}
  0x66   : > { %5362 = dma.hbm_to_vmem [thread:$0]  (!%p6171_p11), %s7302_s4, 16, %s240_s11, [#allocation10]  }
  0x67   : > { %s5931_s17 = scalar_lea.hbm %s6261_s0, 8192  ;;  %s5936_s8 = scalar_lea.hbm %s7300_s2, 16384 }
  0x68   : > { %p5932_p7 = scmp.ne.s32.totalorder %s6261_s0, %s5931_s17  ;;  %p5937_p2 = scmp.lt.s32.totalorder %s6261_s0, %s7300_s2 }
  0x69   : > { %p5938_p0 = scmp.lt.s32.totalorder %s5936_s8, %s5931_s17 }
  0x6a   : > { %p5934_p10 = pnand %p5932_p7, %p5853_p13 }
  0x6b   : > { %p5939_p3 = por %p5938_p0, %p5937_p2 }
  0x6c   : > { %p5935_p5 = pneg %p5934_p10 }
  0x6e   : > { %p5940_p1 = pnand %p5939_p3, %p5935_p5 }
  0x70   : > { %5943 = shalt.err (!%p5940_p1)
}
  0x71   : > { %s5944_s30 = scalar_lea.vmem %s6272_s23, 8192  ;;  %s6081_s7 = smov [#allocation7]  }
  0x72   : > { %p5945_p11 = scmp.ne.s32.totalorder %s6272_s23, %s5944_s30  ;;  %s5949_s1 = sshll.u32 %s6081_s7, 4  ;;  %s5950_s1 = int_to_ptr.vmem [resolvable:$false] %s5949_s1 }
  0x73   : > { %s5951_s11 = scalar_lea.vmem %s5950_s1, 16384  ;;  %p5952_p4 = scmp.lt.s32.totalorder %s6272_s23, %s5950_s1 }
  0x74   : > { %p5947_p6 = pnand %p5945_p11, %p5853_p13  ;;  %p5953_p8 = scmp.lt.s32.totalorder %s5951_s11, %s5944_s30 }
  0x76   : > { %p5948_p12 = pneg %p5947_p6  ;;  %p5954_p7 = por %p5953_p8, %p5952_p4 }
  0x78   : > { %p5955_p10 = pnand %p5954_p7, %p5948_p12 }
  0x7a   : > { %5958 = shalt.err (!%p5955_p10)
}
  0x7b   : > { %s6082_s26 = smov 1024   ;;  %p7330_p13 = scmp.ne.s32.totalorder %s7320_s29, 0 }
  0x7c   : > { %5369 = dma.hbm_to_vmem [thread:$0]  (!%p6207_p9), %s6261_s0, 8192, %s6272_s23, %s6220_s16, %s6082_s26, %s6082_s26, %s6078_s19  }
  0x7d   : > { %294 = sbr.rel (%p7330_p13) target bundleno = 772 (0x304), region = 40 }
  0x82   : > { %s296_s20 = sand.u32 1, %s6143_s25   ;;  %s6302_s13 = sand.u32 1, %s6061_s22  }
  0x83   : > { %s5330_s10 = smul.u32 1152, %s6302_s13  ;;  %s297_s17 = scalar_lea.sflag [#allocation3], %s296_s20 }
  0x84   : > { %p7331_p5 = scmp.ne.s32.totalorder %s7317_s27, 0 }
  0x85   : > { %s6305_s28 = scalar_lea.vmem [#allocation2], %s5330_s10 }
  0x86   : > { %6028 = dma.done.wait (%p7331_p5), %s297_s17, 18432  }
  0x87   : > { %6030 = vsyncadd (%p7331_p5), %s297_s17, 4294948864  ;;  %p7332_p9 = scmp.eq.s32.totalorder %s6143_s25, 0 }
  0x89   : > { %6032 = dma.done.wait (%p7332_p9), [#allocation6], 6144   ;;  %p7333_p2 = pmov %p7332_p9 }
  0x8a   : > { %s4424_s0 = sshll.u32 %s6302_s13, 9 }
  0x8b   : > { %6034 = vsyncadd (%p7333_p2), [#allocation6], 4294961152  ;;  %s6316_s23 = scalar_lea.vmem [#allocation7], %s4424_s0 }
  0x8c   : > { %6036 = dma.done.wait (%p7331_p5), %s297_s17, 8192  }
  0x8d   : > { %6038 = vsyncadd (%p7331_p5), %s297_s17, 4294959104  ;;  %p7334_p0 = pmov %p7333_p2 }
  0x8f   : > { %6040 = dma.done.wait (%p7334_p0), [#allocation6], 16384   ;;  %p7335_p3 = pmov %p7334_p0 }
  0x90   : > { %p7336_p1 = pmov %p7334_p0 }
  0x91   : > { %6042 = vsyncadd (%p7335_p3), [#allocation6], 4294950912 }
  0x92   : > { %6044 = dma.done.wait (%p7336_p1), [#allocation10], 16   ;;  %p7337_p11 = pmov %p7334_p0 }
  0x93   : > { %v5429_v0 = vld [vmem:[%s6305_s28 + $0xac] ss:$12 sps:$4 sm:$0xff]   ;;  %v5433_v2 = vld [vmem:[%s6305_s28 + $0xa8] ss:$12 sps:$4 sm:$0xff]   ;;  %v5439_v6 = vld [vmem:[%s6305_s28 + $0x90] ss:$12 sps:$4 sm:$0xff]  }
  0x94   : > { %6046 = vsyncadd (%p7337_p11), [#allocation10], 4294967280  ;;  %v5431_v1 = vld [vmem:[%s6305_s28 + $0x22c] ss:$12 sps:$4 sm:$0xff]   ;;  %1608 = vmatprep.subr.bf16.mxu0 %v5429_v0  ;;  %v5434_v3 = vld [vmem:[%s6305_s28 + $0x228] ss:$12 sps:$4 sm:$0xff]  }
  0x95   : > { %1721 = vmatprep.subr.bf16.mxu1 %v5431_v1  ;;  %v5435_v4 = vld [vmem:[%s6305_s28 + $0x94] ss:$12 sps:$4 sm:$0xff]   ;;  %1609 = vmatpush1.bf16.msra.mxu0 %v5433_v2  ;;  %v5440_v7 = vld [vmem:[%s6305_s28 + $0x210] ss:$12 sps:$4 sm:$0xff]   ;;  %v5445_v10 = vld [vmem:[%s6305_s28 + $0x78] ss:$12 sps:$4 sm:$0xff]  }
  0x96   : > { %1722 = vmatpush1.bf16.msra.mxu1 %v5434_v3  ;;  %v5437_v5 = vld [vmem:[%s6305_s28 + $0x214] ss:$12 sps:$4 sm:$0xff]   ;;  %1610 = vmatprep.subr.bf16.mxu0 %v5435_v4  ;;  %v5441_v8 = vld [vmem:[%s6305_s28 + $0x7c] ss:$12 sps:$4 sm:$0xff]   ;;  %v5446_v11 = vld [vmem:[%s6305_s28 + $0x1f8] ss:$12 sps:$4 sm:$0xff]  }
  0x97   : > { %1723 = vmatprep.subr.bf16.mxu1 %v5437_v5  ;;  %v5443_v9 = vld [vmem:[%s6305_s28 + $0x1fc] ss:$12 sps:$4 sm:$0xff]   ;;  %v5447_v12 = vld [vmem:[%s6305_s28 + $0x64] ss:$12 sps:$4 sm:$0xff]   ;;  %v5451_v14 = vld [vmem:[%s6305_s28 + $0x60] ss:$12 sps:$4 sm:$0xff]  }
  0x98   : > { %v5449_v13 = vld [vmem:[%s6305_s28 + $0x1e4] ss:$12 sps:$4 sm:$0xff]   ;;  %v5452_v15 = vld [vmem:[%s6305_s28 + $0x1e0] ss:$12 sps:$4 sm:$0xff]   ;;  %v5457_v18 = vld [vmem:[%s6305_s28 + $0x48] ss:$12 sps:$4 sm:$0xff]  }
  0x99   : > { %1611 = vmatpush1.bf16.msra.mxu0 %v5439_v6  ;;  %v5453_v16 = vld [vmem:[%s6305_s28 + $0x4c] ss:$12 sps:$4 sm:$0xff]   ;;  %v5458_v19 = vld [vmem:[%s6305_s28 + $0x1c8] ss:$12 sps:$4 sm:$0xff]   ;;  %v5463_v22 = vld [vmem:[%s6305_s28 + $0x30] ss:$12 sps:$4 sm:$0xff]  }
  0x9a   : > { %1724 = vmatpush1.bf16.msra.mxu1 %v5440_v7  ;;  %1612 = vmatprep.subr.bf16.mxu0 %v5441_v8  ;;  %v5455_v17 = vld [vmem:[%s6305_s28 + $0x1cc] ss:$12 sps:$4 sm:$0xff]   ;;  %v5459_v20 = vld [vmem:[%s6305_s28 + $0x34] ss:$12 sps:$4 sm:$0xff]   ;;  %v5464_v23 = vld [vmem:[%s6305_s28 + $0x1b0] ss:$12 sps:$4 sm:$0xff]  }
  0x9b   : > { %1725 = vmatprep.subr.bf16.mxu1 %v5443_v9  ;;  %v5461_v21 = vld [vmem:[%s6305_s28 + $0x1b4] ss:$12 sps:$4 sm:$0xff]   ;;  %v5465_v24 = vld [vmem:[%s6305_s28 + $0x1c] ss:$12 sps:$4 sm:$0xff]   ;;  %v5469_v26 = vld [vmem:[%s6305_s28 + $0x18] ss:$12 sps:$4 sm:$0xff]  }
  0x9c   : > { %v5467_v25 = vld [vmem:[%s6305_s28 + $0x19c] ss:$12 sps:$4 sm:$0xff]   ;;  %v5470_v27 = vld [vmem:[%s6305_s28 + $0x198] ss:$12 sps:$4 sm:$0xff]   ;;  %v5475_v30 = vld [vmem:[%s6305_s28] ss:$12 sps:$4 sm:$0xff]  }
  0x9d   : > { %1613 = vmatpush1.bf16.msra.mxu0 %v5445_v10  ;;  %v5471_v28 = vld [vmem:[%s6305_s28 + $0x4] ss:$12 sps:$4 sm:$0xff]   ;;  %v5476_v31 = vld [vmem:[%s6305_s28 + $0x180] ss:$12 sps:$4 sm:$0xff]   ;;  %v5481_v34 = vld [vmem:[%s6305_s28 + $0x168] ss:$12 sps:$4 sm:$0xff]  }
  0x9e   : > { %1726 = vmatpush1.bf16.msra.mxu1 %v5446_v11  ;;  %1614 = vmatprep.subr.bf16.mxu0 %v5447_v12  ;;  %v5473_v29 = vld [vmem:[%s6305_s28 + $0x184] ss:$12 sps:$4 sm:$0xff]   ;;  %v5477_v32 = vld [vmem:[%s6305_s28 + $0x16c] ss:$12 sps:$4 sm:$0xff]   ;;  %v5482_v35 = vld [vmem:[%s6305_s28 + $0x2e8] ss:$12 sps:$4 sm:$0xff]  }
  0x9f   : > { %1727 = vmatprep.subr.bf16.mxu1 %v5449_v13  ;;  %v5479_v33 = vld [vmem:[%s6305_s28 + $0x2ec] ss:$12 sps:$4 sm:$0xff]   ;;  %v5483_v36 = vld [vmem:[%s6305_s28 + $0x154] ss:$12 sps:$4 sm:$0xff]   ;;  %v5487_v38 = vld [vmem:[%s6305_s28 + $0x150] ss:$12 sps:$4 sm:$0xff]  }
  0xa0   : > { %v5485_v37 = vld [vmem:[%s6305_s28 + $0x2d4] ss:$12 sps:$4 sm:$0xff]   ;;  %v5488_v39 = vld [vmem:[%s6305_s28 + $0x2d0] ss:$12 sps:$4 sm:$0xff]   ;;  %v5493_v42 = vld [vmem:[%s6305_s28 + $0x138] ss:$12 sps:$4 sm:$0xff]  }
  0xa1   : > { %1615 = vmatpush1.bf16.msra.mxu0 %v5451_v14  ;;  %v5489_v40 = vld [vmem:[%s6305_s28 + $0x13c] ss:$12 sps:$4 sm:$0xff]   ;;  %v5494_v43 = vld [vmem:[%s6305_s28 + $0x2b8] ss:$12 sps:$4 sm:$0xff]   ;;  %v5499_v46 = vld [vmem:[%s6305_s28 + $0x120] ss:$12 sps:$4 sm:$0xff]  }
  0xa2   : > { %1728 = vmatpush1.bf16.msra.mxu1 %v5452_v15  ;;  %1616 = vmatprep.subr.bf16.mxu0 %v5453_v16  ;;  %v5491_v41 = vld [vmem:[%s6305_s28 + $0x2bc] ss:$12 sps:$4 sm:$0xff]   ;;  %v5495_v44 = vld [vmem:[%s6305_s28 + $0x124] ss:$12 sps:$4 sm:$0xff]   ;;  %v5500_v47 = vld [vmem:[%s6305_s28 + $0x2a0] ss:$12 sps:$4 sm:$0xff]  }
  0xa3   : > { %1729 = vmatprep.subr.bf16.mxu1 %v5455_v17  ;;  %v5497_v45 = vld [vmem:[%s6305_s28 + $0x2a4] ss:$12 sps:$4 sm:$0xff]   ;;  %v5501_v48 = vld [vmem:[%s6305_s28 + $0x10c] ss:$12 sps:$4 sm:$0xff]   ;;  %v5505_v52 = vld [vmem:[%s6305_s28 + $0x108] ss:$12 sps:$4 sm:$0xff]  }
  0xa4   : > { %v6379_v49 = vld [vmem:[#allocation5 + $0x4] ss:$24 sps:$4 sm:$0xff]   ;;  %v5503_v50 = vld [vmem:[%s6305_s28 + $0x28c] ss:$12 sps:$4 sm:$0xff]   ;;  %v5506_v53 = vld [vmem:[%s6305_s28 + $0x288] ss:$12 sps:$4 sm:$0xff]  }
  0xa5   : > { %1617 = vmatpush1.bf16.msra.mxu0 %v5457_v18  ;;  %v5530_v51 = vld [vmem:[#allocation5 + $0xc] ss:$24 sps:$4 sm:$0xff]   ;;  %1640 = vmatprep.mubr.bf16.mxu0 %v6379_v49  ;;  %v5507_v54 = vld [vmem:[%s6305_s28 + $0xf4] ss:$12 sps:$4 sm:$0xff]   ;;  %v5511_v56 = vld [vmem:[%s6305_s28 + $0xf0] ss:$12 sps:$4 sm:$0xff]  }
  0xa6   : > { %1730 = vmatpush1.bf16.msra.mxu1 %v5458_v19  ;;  %1618 = vmatprep.subr.bf16.mxu0 %v5459_v20  ;;  %v5509_v55 = vld [vmem:[%s6305_s28 + $0x274] ss:$12 sps:$4 sm:$0xff]   ;;  %v5512_v57 = vld [vmem:[%s6305_s28 + $0x270] ss:$12 sps:$4 sm:$0xff]   ;;  %v5517_v60 = vld [vmem:[%s6305_s28 + $0xd8] ss:$12 sps:$4 sm:$0xff]  }
  0xa7   : > { %1731 = vmatprep.subr.bf16.mxu1 %v5461_v21  ;;  %1753 = vmatprep.mubr.bf16.mxu1 %v5530_v51  ;;  %v5513_v58 = vld [vmem:[%s6305_s28 + $0xdc] ss:$12 sps:$4 sm:$0xff]   ;;  %v5518_v61 = vld [vmem:[%s6305_s28 + $0x258] ss:$12 sps:$4 sm:$0xff]   ;;  %v5523_v0 = vld [vmem:[%s6305_s28 + $0xc0] ss:$12 sps:$4 sm:$0xff]  }
  0xa8   : > { %v5515_v59 = vld [vmem:[%s6305_s28 + $0x25c] ss:$12 sps:$4 sm:$0xff]   ;;  %v5519_v62 = vld [vmem:[%s6305_s28 + $0xc4] ss:$12 sps:$4 sm:$0xff]   ;;  %v5524_v1 = vld [vmem:[%s6305_s28 + $0x240] ss:$12 sps:$4 sm:$0xff]  }
  0xa9   : > { %1619 = vmatpush1.bf16.msra.mxu0 %v5463_v22  ;;  %v5521_v63 = vld [vmem:[%s6305_s28 + $0x244] ss:$12 sps:$4 sm:$0xff]   ;;  %v5533_v2 = vld [vmem:[%s6305_s28 + $0x3ac] ss:$12 sps:$4 sm:$0xff]   ;;  %v5528_v5 = vld [vmem:[#allocation5 + $0x8] ss:$24 sps:$4 sm:$0xff]  }
  0xaa   : > { %1732 = vmatpush1.bf16.msra.mxu1 %v5464_v23  ;;  %1620 = vmatprep.subr.bf16.mxu0 %v5465_v24  ;;  %v6398_v3 = vld [vmem:[#allocation5] ss:$24 sps:$4 sm:$0xff]   ;;  %v5534_v4 = vld [vmem:[%s6305_s28 + $0x170] ss:$12 sps:$4 sm:$0xff]   ;;  %v5531_v6 = vld [vmem:[%s6305_s28 + $0x3a8] ss:$12 sps:$4 sm:$0xff]  }
  0xab   : > { %1733 = vmatprep.subr.bf16.mxu1 %v5467_v25  ;;  %v5535_v7 = vld [vmem:[%s6305_s28 + $0xb0] ss:$12 sps:$4 sm:$0xff]   ;;  %v5538_v8 = vld [vmem:[%s6305_s28 + $0x394] ss:$12 sps:$4 sm:$0xff]   ;;  %v5548_v11 = vld [vmem:[%s6305_s28 + $0x158] ss:$12 sps:$4 sm:$0xff]  }
  0xac   : > { %v6404_v9 = vld [vmem:[#allocation5 + $0x34] ss:$24 sps:$4 sm:$0xff]   ;;  %v5536_v12 = vld [vmem:[%s6305_s28 + $0x390] ss:$12 sps:$4 sm:$0xff]   ;;  %v5549_v14 = vld [vmem:[%s6305_s28 + $0x98] ss:$12 sps:$4 sm:$0xff]  }
  0xad   : > { %1621 = vmatpush1.bf16.msra.mxu0 %v5469_v26  ;;  %v6406_v10 = vld [vmem:[#allocation5 + $0x3c] ss:$24 sps:$4 sm:$0xff]   ;;  %v6414_v15 = vld [vmem:[#allocation5 + $0x30] ss:$24 sps:$4 sm:$0xff]   ;;  %v5562_v16 = vld [vmem:[%s6305_s28 + $0x140] ss:$12 sps:$4 sm:$0xff]  }
  0xae   : > { %1734 = vmatpush1.bf16.msra.mxu1 %v5470_v27  ;;  %1622 = vmatprep.subr.bf16.mxu0 %v5471_v28  ;;  %v5547_v13 = vld [vmem:[%s6305_s28 + $0x37c] ss:$12 sps:$4 sm:$0xff]   ;;  %v5544_v17 = vld [vmem:[#allocation5 + $0x38] ss:$24 sps:$4 sm:$0xff]   ;;  %v6422_v21 = vld [vmem:[#allocation5 + $0x6c] ss:$24 sps:$4 sm:$0xff]  }
  0xaf   : > { %1735 = vmatprep.subr.bf16.mxu1 %v5473_v29  ;;  %v5545_v18 = vld [vmem:[%s6305_s28 + $0x378] ss:$12 sps:$4 sm:$0xff]   ;;  %v5563_v22 = vld [vmem:[%s6305_s28 + $0x80] ss:$12 sps:$4 sm:$0xff]   ;;  %v5576_v23 = vld [vmem:[%s6305_s28 + $0x128] ss:$12 sps:$4 sm:$0xff]  }
  0xb0   : > { %v5552_v19 = vld [vmem:[%s6305_s28 + $0x364] ss:$12 sps:$4 sm:$0xff]   ;;  %v5550_v24 = vld [vmem:[%s6305_s28 + $0x360] ss:$12 sps:$4 sm:$0xff]   ;;  %v5577_v28 = vld [vmem:[%s6305_s28 + $0x68] ss:$12 sps:$4 sm:$0xff]  }
  0xb1   : > { %1623 = vmatpush1.bf16.msra.mxu0 %v5475_v30  ;;  %v6420_v20 = vld [vmem:[#allocation5 + $0x64] ss:$24 sps:$4 sm:$0xff]   ;;  %v6430_v25 = vld [vmem:[#allocation5 + $0x60] ss:$24 sps:$4 sm:$0xff]   ;;  %v5559_v29 = vld [vmem:[%s6305_s28 + $0x348] ss:$12 sps:$4 sm:$0xff]  }
  0xb2   : > { %1736 = vmatpush1.bf16.msra.mxu1 %v5476_v31  ;;  %1624 = vmatprep.subr.bf16.mxu0 %v5477_v32  ;;  %v5558_v26 = vld [vmem:[#allocation5 + $0x68] ss:$24 sps:$4 sm:$0xff]   ;;  %v5561_v27 = vld [vmem:[%s6305_s28 + $0x34c] ss:$12 sps:$4 sm:$0xff]   ;;  %v6438_v32 = vld [vmem:[#allocation5 + $0x9c] ss:$24 sps:$4 sm:$0xff]  }
  0xb3   : > { %1737 = vmatprep.subr.bf16.mxu1 %v5479_v33  ;;  %v6435_v30 = vld [vmem:[#allocation5 + $0x94] ss:$24 sps:$4 sm:$0xff]   ;;  %v5564_v33 = vld [vmem:[%s6305_s28 + $0x330] ss:$12 sps:$4 sm:$0xff]   ;;  %v6469_v51 = vld [vmem:[#allocation5 + $0xc8] ss:$24 sps:$4 sm:$0xff]  }
  0xb4   : > { %v5566_v31 = vld [vmem:[%s6305_s28 + $0x334] ss:$12 sps:$4 sm:$0xff]   ;;  %s5331_s27 = smul.u32 384, %s6302_s13  ;;  %s4232_s15 = scalar_lea.sflag [#allocation4], %s6302_s13 }
  0xb5   : > { %1625 = vmatpush2.bf16.msra.mxu0 %v5481_v34  ;;  %v5590_v34 = vld [vmem:[%s6305_s28 + $0x110] ss:$12 sps:$4 sm:$0xff]   ;;  %s5332_s12 = smul.u32 6144, %s6143_s25  ;;  %p7378_p12 = scmp.ne.s32.totalorder %s7325_s18, 0 }
  0xb6   : > { %1738 = vmatpush2.bf16.msra.mxu1 %v5482_v35  ;;  %1626 = vmatprep.subr.bf16.mxu0 %v5483_v36  ;;  %v5591_v35 = vld [vmem:[%s6305_s28 + $0x50] ss:$12 sps:$4 sm:$0xff]   ;;  %v5604_v36 = vld [vmem:[%s6305_s28 + $0xf8] ss:$12 sps:$4 sm:$0xff]   ;;  %s6843_s29 = scalar_lea.vmem [#allocation11], %s5331_s27  ;;  %s6083_s30 = smov [#allocation11]  }
  0xb7   : > { %1739 = vmatprep.subr.bf16.mxu1 %v5485_v37  ;;  %v5575_v37 = vld [vmem:[%s6305_s28 + $0x31c] ss:$12 sps:$4 sm:$0xff]   ;;  %s4249_s16 = sshll.u32 %s6843_s29, 4  ;;  %s7134_s8 = scalar_lea.hbm %s7303_s5, %s5332_s12  ;;  %s7136_s16 = int_to_ptr.vmem [resolvable:$true] %s4249_s16 }
  0xb8   : > { %s5959_s14 = scalar_lea.vmem %s7136_s16, 6144  ;;  %s5963_s7 = sshll.u32 %s6083_s30, 4  ;;  %s5964_s7 = int_to_ptr.vmem [resolvable:$false] %s5963_s7 }
  0xb9   : > { %1627 = vmatpush2.bf16.msra.mxu0 %v5487_v38  ;;  %v6448_v38 = vld [vmem:[#allocation5 + $0x90] ss:$24 sps:$4 sm:$0xff]   ;;  %p5960_p6 = scmp.ne.s32.totalorder %s7136_s16, %s5959_s14  ;;  %s5965_s1 = scalar_lea.vmem %s5964_s7, 12288 }
  0xba   : > { %1740 = vmatpush2.bf16.msra.mxu1 %v5488_v39  ;;  %1628 = vmatprep.subr.bf16.mxu0 %v5489_v40  ;;  %v6450_v39 = vld [vmem:[#allocation5 + $0x98] ss:$24 sps:$4 sm:$0xff]   ;;  %p5966_p7 = scmp.lt.s32.totalorder %s7136_s16, %s5964_s7  ;;  %p5967_p10 = scmp.lt.s32.totalorder %s5965_s1, %s5959_s14 }
  0xbb   : > { %1741 = vmatprep.subr.bf16.mxu1 %v5491_v41  ;;  %v5573_v40 = vld [vmem:[%s6305_s28 + $0x318] ss:$12 sps:$4 sm:$0xff]   ;;  %p5961_p4 = pnand %p5960_p6, %p7378_p12 }
  0xbc   : > { %v5580_v41 = vld [vmem:[%s6305_s28 + $0x304] ss:$12 sps:$4 sm:$0xff]   ;;  %p5968_p13 = por %p5967_p10, %p5966_p7 }
  0xbd   : > { %1629 = vmatpush2.bf16.msra.mxu0 %v5493_v42  ;;  %v6454_v42 = vld [vmem:[#allocation5 + $0xc4] ss:$24 sps:$4 sm:$0xff]   ;;  %p5962_p8 = pneg %p5961_p4 }
  0xbe   : > { %1742 = vmatpush2.bf16.msra.mxu1 %v5494_v43  ;;  %1630 = vmatprep.subr.bf16.mxu0 %v5495_v44  ;;  %v6456_v43 = vld [vmem:[#allocation5 + $0xcc] ss:$24 sps:$4 sm:$0xff]  }
  0xbf   : > { %1743 = vmatprep.subr.bf16.mxu1 %v5497_v45  ;;  %v5605_v44 = vld [vmem:[%s6305_s28 + $0x38] ss:$12 sps:$4 sm:$0xff]   ;;  %v5618_v45 = vld [vmem:[%s6305_s28 + $0xe0] ss:$12 sps:$4 sm:$0xff]   ;;  %p5969_p5 = pnand %p5968_p13, %p5962_p8 }
  0xc1   : > { %1631 = vmatpush2.bf16.msra.mxu0 %v5499_v46  ;;  %v5578_v46 = vld [vmem:[%s6305_s28 + $0x300] ss:$12 sps:$4 sm:$0xff]  }
  0xc2   : > { %1744 = vmatpush2.bf16.msra.mxu1 %v5500_v47  ;;  %1632 = vmatprep.subr.bf16.mxu0 %v5501_v48  ;;  %v6465_v47 = vld [vmem:[#allocation5 + $0xc0] ss:$24 sps:$4 sm:$0xff]  }
  0xc3   : > { %1745 = vmatprep.subr.bf16.mxu1 %v5503_v50  ;;  %v5589_v48 = vld [vmem:[%s6305_s28 + $0x46c] ss:$12 sps:$4 sm:$0xff]  }
  0xc4   : > { %v5619_v50 = vld [vmem:[%s6305_s28 + $0x20] ss:$12 sps:$4 sm:$0xff]  }
  0xc5   : > { %1633 = vmatpush2.bf16.msra.mxu0 %v5505_v52  ;;  %v5587_v52 = vld [vmem:[%s6305_s28 + $0x468] ss:$12 sps:$4 sm:$0xff]  }
  0xc6   : > { %1746 = vmatpush2.bf16.msra.mxu1 %v5506_v53  ;;  %1634 = vmatprep.subr.bf16.mxu0 %v5507_v54  ;;  %v6472_v53 = vld [vmem:[#allocation5 + $0xf4] ss:$24 sps:$4 sm:$0xff]  }
  0xc7   : > { %1747 = vmatprep.subr.bf16.mxu1 %v5509_v55  ;;  %v5594_v54 = vld [vmem:[%s6305_s28 + $0x454] ss:$12 sps:$4 sm:$0xff]  }
  0xc8   : > { %v6475_v55 = vld [vmem:[#allocation5 + $0xfc] ss:$24 sps:$4 sm:$0xff]  }
  0xc9   : > { %1635 = vmatpush2.bf16.msra.mxu0 %v5511_v56  ;;  %v5632_v56 = vld [vmem:[%s6305_s28 + $0xc8] ss:$12 sps:$4 sm:$0xff]  }
  0xca   : > { %1748 = vmatpush2.bf16.msra.mxu1 %v5512_v57  ;;  %1636 = vmatprep.subr.bf16.mxu0 %v5513_v58  ;;  %v5633_v57 = vld [vmem:[%s6305_s28 + $0x8] ss:$12 sps:$4 sm:$0xff]   ;;  %v5592_v58 = vld [vmem:[%s6305_s28 + $0x450] ss:$12 sps:$4 sm:$0xff]  }
  0xcb   : > { %1749 = vmatprep.subr.bf16.mxu1 %v5515_v59  ;;  %v6484_v59 = vld [vmem:[#allocation5 + $0xf0] ss:$24 sps:$4 sm:$0xff]  }
  0xcd   : > { %1637 = vmatpush2.bf16.msra.mxu0 %v5517_v60  ;;  %v5603_v60 = vld [vmem:[%s6305_s28 + $0x43c] ss:$12 sps:$4 sm:$0xff]  }
  0xce   : > { %1750 = vmatpush2.bf16.msra.mxu1 %v5518_v61  ;;  %1638 = vmatprep.subr.bf16.mxu0 %v5519_v62  ;;  %v6487_v61 = vld [vmem:[#allocation5 + $0xf8] ss:$24 sps:$4 sm:$0xff]  }
  0xcf   : > { %1751 = vmatprep.subr.bf16.mxu1 %v5521_v63  ;;  %v5601_v62 = vld [vmem:[%s6305_s28 + $0x438] ss:$12 sps:$4 sm:$0xff]  }
  0xd0   : > { %v5608_v63 = vld [vmem:[%s6305_s28 + $0x424] ss:$12 sps:$4 sm:$0xff]  }
  0xd1   : > { %1639 = vmatpush2.bf16.msra.mxu0 %v5523_v0  ;;  %v6491_v0 = vld [vmem:[#allocation5 + $0x124] ss:$24 sps:$4 sm:$0xff]  }
  0xd2   : > { %1752 = vmatpush2.bf16.msra.mxu1 %v5524_v1  ;;  %1834 = vmatprep.subr.bf16.mxu0 %v5533_v2  ;;  %v6493_v1 = vld [vmem:[#allocation5 + $0x12c] ss:$24 sps:$4 sm:$0xff]   ;;  %v5642_v2 = vld [vmem:[%s6305_s28 + $0x470] ss:$12 sps:$4 sm:$0xff]  }
  0xd3   : > { %4816 = vmatprep.subr.bf16.mxu1 %v5534_v4  ;;  %v5606_v4 = vld [vmem:[%s6305_s28 + $0x420] ss:$12 sps:$4 sm:$0xff]  }
  0xd4   : > { %1641 = vmatmul.mubr.bf16.vlgmr.msra.gmra.mxu0 %v6398_v3 }
  0xd5   : > { %1754 = vmatmul.mubr.bf16.vlgmr.msra.gmra.mxu1 %v5528_v5  ;;  %1835 = vmatpush1.bf16.msra.mxu0 %v5531_v6  ;;  %v6501_v5 = vld [vmem:[#allocation5 + $0x120] ss:$24 sps:$4 sm:$0xff]  }
  0xd6   : > { %4817 = vmatpush3.bf16.msra.mxu1 %v5535_v7  ;;  %1836 = vmatprep.subr.bf16.mxu0 %v5538_v8  ;;  %v6503_v6 = vld [vmem:[#allocation5 + $0x128] ss:$24 sps:$4 sm:$0xff]   ;;  %v5617_v7 = vld [vmem:[%s6305_s28 + $0x40c] ss:$12 sps:$4 sm:$0xff]  }
  0xd7   : > { %1650 = vmatprep.mubr.bf16.mxu0 %v6404_v9  ;;  %1763 = vmatprep.mubr.bf16.mxu1 %v6406_v10  ;;  %v5615_v8 = vld [vmem:[%s6305_s28 + $0x408] ss:$12 sps:$4 sm:$0xff]  }
  0xd8   : > { %4818 = vmatprep.subr.bf16.mxu1 %v5548_v11  ;;  %v5622_v11 = vld [vmem:[%s6305_s28 + $0x3f4] ss:$12 sps:$4 sm:$0xff]  }
  0xd9   : > { %1837 = vmatpush1.bf16.msra.mxu0 %v5536_v12  ;;  %v6508_v12 = vld [vmem:[#allocation5 + $0x154] ss:$24 sps:$4 sm:$0xff]  }
  0xda   : > { %4819 = vmatpush3.bf16.msra.mxu1 %v5549_v14  ;;  %1838 = vmatprep.subr.bf16.mxu0 %v5547_v13  ;;  %v6510_v13 = vld [vmem:[#allocation5 + $0x15c] ss:$24 sps:$4 sm:$0xff]  }
  0xdb   : > { %4820 = vmatprep.subr.bf16.mxu1 %v5562_v16  ;;  %v5620_v14 = vld [vmem:[%s6305_s28 + $0x3f0] ss:$12 sps:$4 sm:$0xff]  }
  0xdc   : > { %1651 = vmatmul.mubr.bf16.gmra.mxu0 %v6414_v15  ;;  %v5631_v16 = vld [vmem:[%s6305_s28 + $0x3dc] ss:$12 sps:$4 sm:$0xff]  }
  0xdd   : > { %1764 = vmatmul.mubr.bf16.gmra.mxu1 %v5544_v17  ;;  %1839 = vmatpush1.bf16.msra.mxu0 %v5545_v18  ;;  %v6518_v17 = vld [vmem:[#allocation5 + $0x150] ss:$24 sps:$4 sm:$0xff]  }
  0xde   : > { %1660 = vmatprep.mubr.bf16.mxu0 %v6420_v20  ;;  %1840 = vmatprep.subr.bf16.mxu0 %v5552_v19  ;;  %v6520_v18 = vld [vmem:[#allocation5 + $0x158] ss:$24 sps:$4 sm:$0xff]  }
  0xdf   : > { %1773 = vmatprep.mubr.bf16.mxu1 %v6422_v21  ;;  %4821 = vmatpush3.bf16.msra.mxu1 %v5563_v22  ;;  %v5629_v19 = vld [vmem:[%s6305_s28 + $0x3d8] ss:$12 sps:$4 sm:$0xff]   ;;  %v6523_v22 = vld [vmem:[#allocation5 + $0x14] ss:$24 sps:$4 sm:$0xff]  }
  0xe0   : > { %4822 = vmatprep.subr.bf16.mxu1 %v5576_v23  ;;  %v5636_v23 = vld [vmem:[%s6305_s28 + $0x3c4] ss:$12 sps:$4 sm:$0xff]  }
  0xe1   : > { %1841 = vmatpush1.bf16.msra.mxu0 %v5550_v24  ;;  %v5634_v24 = vld [vmem:[%s6305_s28 + $0x3c0] ss:$12 sps:$4 sm:$0xff]  }
  0xe2   : > { %1842 = vmatprep.subr.bf16.mxu0 %v5561_v27  ;;  %v5640_v27 = vld [vmem:[%s6305_s28 + $0x2f0] ss:$12 sps:$4 sm:$0xff]  }
  0xe3   : > { %4823 = vmatpush3.bf16.msra.mxu1 %v5577_v28  ;;  %v5641_v28 = vld [vmem:[%s6305_s28 + $0x230] ss:$12 sps:$4 sm:$0xff]  }
  0xe4   : > { %1661 = vmatmul.mubr.bf16.gmra.mxu0 %v6430_v25  ;;  %4824 = vmatprep.subr.bf16.mxu1 %v5590_v34  ;;  %v5648_v34 = vld [vmem:[%s6305_s28 + $0x218] ss:$12 sps:$4 sm:$0xff]  }
  0xe5   : > { %1774 = vmatmul.mubr.bf16.gmra.mxu1 %v5558_v26  ;;  %1843 = vmatpush1.bf16.msra.mxu0 %v5559_v29  ;;  %v6530_v26 = vld [vmem:[#allocation5 + $0x10] ss:$24 sps:$4 sm:$0xff]  }
  0xe6   : > { %1670 = vmatprep.mubr.bf16.mxu0 %v6435_v30  ;;  %1844 = vmatprep.subr.bf16.mxu0 %v5566_v31  ;;  %v5643_v29 = vld [vmem:[%s6305_s28 + $0x3b0] ss:$12 sps:$4 sm:$0xff]  }
  0xe7   : > { %1783 = vmatprep.mubr.bf16.mxu1 %v6438_v32  ;;  %4825 = vmatpush3.bf16.msra.mxu1 %v5591_v35  ;;  %v6536_v31 = vld [vmem:[#allocation5 + $0x44] ss:$24 sps:$4 sm:$0xff]  }
  0xe8   : > { %4826 = vmatprep.subr.bf16.mxu1 %v5604_v36  ;;  %v5649_v35 = vld [vmem:[%s6305_s28 + $0x458] ss:$12 sps:$4 sm:$0xff]  }
  0xe9   : > { %1845 = vmatpush1.bf16.msra.mxu0 %v5564_v33  ;;  %v5647_v33 = vld [vmem:[%s6305_s28 + $0x2d8] ss:$12 sps:$4 sm:$0xff]  }
  0xea   : > { %1846 = vmatprep.subr.bf16.mxu0 %v5575_v37  ;;  %v5650_v36 = vld [vmem:[%s6305_s28 + $0x398] ss:$12 sps:$4 sm:$0xff]   ;;  %v5656_v37 = vld [vmem:[%s6305_s28 + $0x440] ss:$12 sps:$4 sm:$0xff]  }
  0xeb   : > { %4827 = vmatpush3.bf16.msra.mxu1 %v5605_v44  ;;  %v5657_v44 = vld [vmem:[%s6305_s28 + $0x380] ss:$12 sps:$4 sm:$0xff]  }
  0xec   : > { %1671 = vmatmul.mubr.bf16.gmra.mxu0 %v6448_v38  ;;  %4828 = vmatprep.subr.bf16.mxu1 %v5618_v45  ;;  %v5661_v45 = vld [vmem:[%s6305_s28 + $0x2a8] ss:$12 sps:$4 sm:$0xff]  }
  0xed   : > { %1784 = vmatmul.mubr.bf16.gmra.mxu1 %v6450_v39  ;;  %1847 = vmatpush1.bf16.msra.mxu0 %v5573_v40  ;;  %v6548_v40 = vld [vmem:[#allocation5 + $0x40] ss:$24 sps:$4 sm:$0xff]  }
  0xee   : > { %1680 = vmatprep.mubr.bf16.mxu0 %v6454_v42  ;;  %1848 = vmatprep.subr.bf16.mxu0 %v5580_v41  ;;  %v6550_v41 = vld [vmem:[#allocation5 + $0x74] ss:$24 sps:$4 sm:$0xff]  }
  0xef   : > { %1793 = vmatprep.mubr.bf16.mxu1 %v6456_v43  ;;  %4829 = vmatpush3.bf16.msra.mxu1 %v5619_v50  ;;  %v6562_v50 = vld [vmem:[#allocation5 + $0x70] ss:$24 sps:$4 sm:$0xff]  }
  0xf0   : > { %4830 = vmatprep.subr.bf16.mxu1 %v5632_v56  ;;  %v5669_v56 = vld [vmem:[%s6305_s28 + $0x1d0] ss:$12 sps:$4 sm:$0xff]  }
  0xf1   : > { %1849 = vmatpush1.bf16.msra.mxu0 %v5578_v46  ;;  %v5662_v46 = vld [vmem:[%s6305_s28 + $0x1e8] ss:$12 sps:$4 sm:$0xff]  }
  0xf2   : > { %1850 = vmatprep.subr.bf16.mxu0 %v5589_v48  ;;  %v5664_v48 = vld [vmem:[%s6305_s28 + $0x368] ss:$12 sps:$4 sm:$0xff]  }
  0xf3   : > { %4831 = vmatpush3.bf16.msra.mxu1 %v5633_v57  ;;  %v5671_v57 = vld [vmem:[%s6305_s28 + $0x350] ss:$12 sps:$4 sm:$0xff]  }
  0xf4   : > { %1681 = vmatmul.mubr.bf16.gmra.mxu0 %v6465_v47  ;;  %4944 = vmatprep.subr.bf16.mxu1 %v5642_v2  ;;  %v5682_v2 = vld [vmem:[%s6305_s28 + $0x260] ss:$12 sps:$4 sm:$0xff]  }
  0xf5   : > { %1794 = vmatmul.mubr.bf16.gmra.mxu1 %v6469_v51  ;;  %1851 = vmatpush2.bf16.msra.mxu0 %v5587_v52  ;;  %v5668_v52 = vld [vmem:[%s6305_s28 + $0x290] ss:$12 sps:$4 sm:$0xff]  }
  0xf6   : > { %1690 = vmatprep.mubr.bf16.mxu0 %v6472_v53  ;;  %1852 = vmatprep.subr.bf16.mxu0 %v5594_v54  ;;  %v6565_v54 = vld [vmem:[#allocation5 + $0xa4] ss:$24 sps:$4 sm:$0xff]  }
  0xf7   : > { %1803 = vmatprep.mubr.bf16.mxu1 %v6475_v55 }
  0xf9   : > { %1853 = vmatpush2.bf16.msra.mxu0 %v5592_v58  ;;  %v5677_v58 = vld [vmem:[%s6305_s28 + $0x3f8] ss:$12 sps:$4 sm:$0xff]  }
  0xfa   : > { %1854 = vmatprep.subr.bf16.mxu0 %v5603_v60  ;;  %v5676_v60 = vld [vmem:[%s6305_s28 + $0x1b8] ss:$12 sps:$4 sm:$0xff]  }
  0xfc   : > { %1691 = vmatmul.mubr.bf16.gmra.mxu0 %v6484_v59 }
  0xfd   : > { %1804 = vmatmul.mubr.bf16.gmra.mxu1 %v6487_v61  ;;  %1855 = vmatpush2.bf16.msra.mxu0 %v5601_v62  ;;  %v5678_v62 = vld [vmem:[%s6305_s28 + $0x338] ss:$12 sps:$4 sm:$0xff]  }
  0xfe   : > { %1700 = vmatprep.mubr.bf16.mxu0 %v6491_v0  ;;  %1856 = vmatprep.subr.bf16.mxu0 %v5608_v63  ;;  %v6578_v63 = vld [vmem:[#allocation5 + $0xa0] ss:$24 sps:$4 sm:$0xff]  }
  0xff   : > { %1813 = vmatprep.mubr.bf16.mxu1 %v6493_v1 }
 0x101   : > { %1857 = vmatpush2.bf16.msra.mxu0 %v5606_v4  ;;  %v6581_v4 = vld [vmem:[#allocation5 + $0xd4] ss:$24 sps:$4 sm:$0xff]  }
 0x102   : > { %1858 = vmatprep.subr.bf16.mxu0 %v5617_v7  ;;  %v5683_v7 = vld [vmem:[%s6305_s28 + $0x1a0] ss:$12 sps:$4 sm:$0xff]  }
 0x104   : > { %1701 = vmatmul.mubr.bf16.gmra.mxu0 %v6501_v5 }
 0x105   : > { %1814 = vmatmul.mubr.bf16.gmra.mxu1 %v6503_v6  ;;  %1859 = vmatpush2.bf16.msra.mxu0 %v5615_v8  ;;  %v5685_v8 = vld [vmem:[%s6305_s28 + $0x320] ss:$12 sps:$4 sm:$0xff]  }
 0x106   : > { %1710 = vmatprep.mubr.bf16.mxu0 %v6508_v12  ;;  %1860 = vmatprep.subr.bf16.mxu0 %v5622_v11  ;;  %v5689_v11 = vld [vmem:[%s6305_s28 + $0x248] ss:$12 sps:$4 sm:$0xff]  }
 0x107   : > { %1823 = vmatprep.mubr.bf16.mxu1 %v6510_v13 }
 0x109   : > { %1861 = vmatpush2.bf16.msra.mxu0 %v5620_v14  ;;  %v5690_v14 = vld [vmem:[%s6305_s28 + $0x188] ss:$12 sps:$4 sm:$0xff]  }
 0x10a   : > { %1862 = vmatprep.subr.bf16.mxu0 %v5631_v16  ;;  %v5692_v16 = vld [vmem:[%s6305_s28 + $0x308] ss:$12 sps:$4 sm:$0xff]  }
 0x10c   : > { %1711 = vmatmul.mubr.bf16.gmra.mxu0 %v6518_v17 }
 0x10d   : > { %1824 = vmatmul.mubr.bf16.gmra.mxu1 %v6520_v18  ;;  %1863 = vmatpush2.bf16.msra.mxu0 %v5629_v19  ;;  %v5693_v19 = vld [vmem:[#allocation8 + $0x78] sm:$0xff]  }
 0x10e   : > { %1866 = vmatprep.mubr.bf16.mxu0 %v6523_v22  ;;  %1864 = vmatprep.subr.bf16.mxu0 %v5636_v23  ;;  %v5695_v23 = vld [vmem:[#allocation8 + $0xf8] sm:$0xff]  }
 0x10f   : > { %1979 = vmatprep.mubr.bf16.mxu1 %v6379_v49  ;;  %v5654_v49 = vld [vmem:[%s6305_s28 + $0x2c0] ss:$12 sps:$4 sm:$0xff]  }
 0x111   : > { %1865 = vmatpush2.bf16.msra.mxu0 %v5634_v24  ;;  %v6594_v24 = vld [vmem:[#allocation5 + $0xd0] ss:$24 sps:$4 sm:$0xff]  }
 0x112   : > { %4880 = vmatprep.subr.bf16.mxu0 %v5640_v27  ;;  %v6596_v27 = vld [vmem:[#allocation5 + $0x104] ss:$24 sps:$4 sm:$0xff]  }
 0x114   : > { %1867 = vmatmul.mubr.bf16.vlgmr.msra.gmra.mxu0 %v6530_v26 }
 0x115   : > { %1980 = vmatmul.mubr.bf16.vlgmr.msra.gmra.mxu1 %v6398_v3  ;;  %4881 = vmatpush3.bf16.msra.mxu0 %v5641_v28  ;;  %v5655_v3 = vld [vmem:[%s6305_s28 + $0x200] ss:$12 sps:$4 sm:$0xff]   ;;  %v6610_v28 = vld [vmem:[#allocation5 + $0x130] ss:$24 sps:$4 sm:$0xff]  }
 0x116   : > { %4945 = vmatpush3.bf16.msra.mxu1 %v5643_v29  ;;  %1876 = vmatprep.mubr.bf16.mxu0 %v6536_v31  ;;  %v6612_v29 = vld [vmem:[#allocation5 + $0x164] ss:$24 sps:$4 sm:$0xff]  }
 0x117   : > { %1987 = vmatprep.mubr.bf16.mxu1 %v6404_v9  ;;  %4882 = vmatprep.subr.bf16.mxu0 %v5647_v33  ;;  %v5663_v9 = vld [vmem:[%s6305_s28 + $0x428] ss:$12 sps:$4 sm:$0xff]  }
 0x118   : > { %4946 = vmatprep.subr.bf16.mxu1 %v5649_v35  ;;  %v5697_v33 = vld [vmem:[#allocation8 + $0x70] sm:$0xff]   ;;  %v5822_v35 = vld [vmem:[#allocation5 + $0x8] ss:$24 sps:$4 sm:$0xff]  }
 0x119   : > { %4883 = vmatpush3.bf16.msra.mxu0 %v5648_v34  ;;  %v5699_v34 = vld [vmem:[#allocation8 + $0xf0] sm:$0xff]  }
 0x11a   : > { %4947 = vmatpush3.bf16.msra.mxu1 %v5650_v36  ;;  %4884 = vmatprep.subr.bf16.mxu0 %v5654_v49  ;;  %v5701_v36 = vld [vmem:[#allocation8 + $0x68] sm:$0xff]  }
 0x11b   : > { %4948 = vmatprep.subr.bf16.mxu1 %v5656_v37  ;;  %v5704_v49 = vld [vmem:[#allocation8 + $0xa8] sm:$0xff]   ;;  %v5705_v37 = vld [vmem:[#allocation8 + $0x60] sm:$0xff]  }
 0x11c   : > { %1877 = vmatmul.mubr.bf16.gmra.mxu0 %v6548_v40 }
 0x11d   : > { %1988 = vmatmul.mubr.bf16.gmra.mxu1 %v6414_v15  ;;  %1886 = vmatprep.mubr.bf16.mxu0 %v6550_v41  ;;  %v5670_v15 = vld [vmem:[%s6305_s28 + $0x410] ss:$12 sps:$4 sm:$0xff]  }
 0x11e   : > { %1995 = vmatprep.mubr.bf16.mxu1 %v6420_v20  ;;  %4885 = vmatpush3.bf16.msra.mxu0 %v5655_v3  ;;  %v5675_v20 = vld [vmem:[%s6305_s28 + $0x278] ss:$12 sps:$4 sm:$0xff]  }
 0x11f   : > { %4949 = vmatpush3.bf16.msra.mxu1 %v5657_v44  ;;  %4886 = vmatprep.subr.bf16.mxu0 %v5661_v45  ;;  %v5823_v3 = vld [vmem:[#allocation5 + $0x38] ss:$24 sps:$4 sm:$0xff]  }
 0x120   : > { %4950 = vmatprep.subr.bf16.mxu1 %v5663_v9  ;;  %v5709_v44 = vld [vmem:[#allocation8 + $0x58] sm:$0xff]  }
 0x121   : > { %v5711_v45 = vld [vmem:[#allocation8 + $0xd8] sm:$0xff]  }
 0x122   : > { %4887 = vmatpush3.bf16.msra.mxu0 %v5662_v46  ;;  %v5710_v9 = vld [vmem:[#allocation8 + $0x18] sm:$0xff]  }
 0x123   : > { %4951 = vmatpush3.bf16.msra.mxu1 %v5664_v48  ;;  %4888 = vmatprep.subr.bf16.mxu0 %v5668_v52  ;;  %v5712_v46 = vld [vmem:[#allocation8 + $0x98] sm:$0xff]   ;;  %v5713_v48 = vld [vmem:[#allocation8 + $0x50] sm:$0xff]   ;;  %v5824_v52 = vld [vmem:[#allocation5 + $0x68] ss:$24 sps:$4 sm:$0xff]  }
 0x124   : > { %4952 = vmatprep.subr.bf16.mxu1 %v5670_v15  ;;  %1887 = vmatmul.mubr.bf16.gmra.mxu0 %v6562_v50  ;;  %v5717_v15 = vld [vmem:[#allocation8 + $0x48] sm:$0xff]  }
 0x125   : > { %1996 = vmatmul.mubr.bf16.gmra.mxu1 %v6430_v25  ;;  %1896 = vmatprep.mubr.bf16.mxu0 %v6565_v54  ;;  %v5684_v25 = vld [vmem:[%s6305_s28 + $0x3e0] ss:$12 sps:$4 sm:$0xff]  }
 0x126   : > { %2003 = vmatprep.mubr.bf16.mxu1 %v6435_v30  ;;  %4889 = vmatpush3.bf16.msra.mxu0 %v5669_v56  ;;  %v5691_v30 = vld [vmem:[%s6305_s28 + $0x3c8] ss:$12 sps:$4 sm:$0xff]  }
 0x127   : > { %4953 = vmatpush3.bf16.msra.mxu1 %v5671_v57  ;;  %4890 = vmatprep.subr.bf16.mxu0 %v5675_v20  ;;  %v5719_v56 = vld [vmem:[#allocation8 + $0xc8] sm:$0xff]  }
 0x128   : > { %4954 = vmatprep.subr.bf16.mxu1 %v5677_v58  ;;  %v5718_v57 = vld [vmem:[#allocation8 + $0x8] sm:$0xff]   ;;  %v5721_v58 = vld [vmem:[#allocation8 + $0x40] sm:$0xff]  }
 0x129   : > { %v5720_v20 = vld [vmem:[#allocation8 + $0x88] sm:$0xff]  }
 0x12a   : > { %4891 = vmatpush3.bf16.msra.mxu0 %v5676_v60  ;;  %v5725_v60 = vld [vmem:[#allocation8 + $0x178] sm:$0xff]  }
 0x12b   : > { %4955 = vmatpush3.bf16.msra.mxu1 %v5678_v62  ;;  %4892 = vmatprep.subr.bf16.mxu0 %v5682_v2  ;;  %v5726_v62 = vld [vmem:[#allocation8 + $0x1f8] sm:$0xff]  }
 0x12c   : > { %4956 = vmatprep.subr.bf16.mxu1 %v5684_v25  ;;  %1897 = vmatmul.mubr.bf16.gmra.mxu0 %v6578_v63  ;;  %v5727_v2 = vld [vmem:[#allocation8 + $0x138] sm:$0xff]   ;;  %v2303_v25 = vld [vmem:[%s6316_s23 + $0x88] sm:$0xff] }
 0x12d   : > { %2004 = vmatmul.mubr.bf16.gmra.mxu1 %v6448_v38  ;;  %1906 = vmatprep.mubr.bf16.mxu0 %v6581_v4  ;;  %v6602_v38 = vld [vmem:[#allocation5 + $0x100] ss:$24 sps:$4 sm:$0xff]  }
 0x12e   : > { %2011 = vmatprep.mubr.bf16.mxu1 %v6454_v42  ;;  %4893 = vmatpush3.bf16.msra.mxu0 %v5683_v7  ;;  %v6604_v42 = vld [vmem:[#allocation5 + $0x134] ss:$24 sps:$4 sm:$0xff]  }
 0x12f   : > { %4957 = vmatpush3.bf16.msra.mxu1 %v5685_v8  ;;  %4894 = vmatprep.subr.bf16.mxu0 %v5689_v11  ;;  %v2311_v8 = vld [vmem:[%s6316_s23 + $0xc8] sm:$0xff]  ;;  %v5729_v11 = vld [vmem:[#allocation8 + $0x170] sm:$0xff]  }
 0x130   : > { %4958 = vmatprep.subr.bf16.mxu1 %v5691_v30  ;;  %v5730_v30 = vld [vmem:[#allocation8 + $0x1f0] sm:$0xff]  }
 0x132   : > { %4895 = vmatpush3.bf16.msra.mxu0 %v5690_v14 }
 0x133   : > { %4959 = vmatpush3.bf16.msra.mxu1 %v5692_v16  ;;  %5008 = vmatprep.subr.bf16.mxu0 %v5693_v19  ;;  %v4638_v16 = vcombine.high %v2303_v25, %v2311_v8 }
 0x134   : > { %5048 = vmatprep.subr.bf16.mxu1 %v5695_v23  ;;  %1907 = vmatmul.mubr.bf16.gmra.mxu0 %v6594_v24  ;;  %v5731_v23 = vld [vmem:[#allocation8 + $0x130] sm:$0xff]  }
 0x135   : > { %2012 = vmatmul.mubr.bf16.gmra.mxu1 %v6465_v47  ;;  %1916 = vmatprep.mubr.bf16.mxu0 %v6596_v27  ;;  %v6618_v47 = vld [vmem:[#allocation5 + $0x160] ss:$24 sps:$4 sm:$0xff]  }
 0x136   : > { %2019 = vmatprep.mubr.bf16.mxu1 %v6472_v53  ;;  %v5821_v53 = vld [vmem:[#allocation5 + $0xc] ss:$24 sps:$4 sm:$0xff]  }
 0x13c   : > { %1917 = vmatmul.mubr.bf16.gmra.mxu0 %v6602_v38 }
 0x13d   : > { %2020 = vmatmul.mubr.bf16.gmra.mxu1 %v6484_v59  ;;  %1926 = vmatprep.mubr.bf16.mxu0 %v6604_v42  ;;  %v5694_v59 = vld [vmem:[#allocation8 + $0x38] sm:$0xff]  }
 0x13e   : > { %2027 = vmatprep.mubr.bf16.mxu1 %v6491_v0  ;;  %v5696_v0 = vld [vmem:[#allocation8 + $0xb8] sm:$0xff]  }
 0x144   : > { %1927 = vmatmul.mubr.bf16.gmra.mxu0 %v6610_v28 }
 0x145   : > { %2028 = vmatmul.mubr.bf16.gmra.mxu1 %v6501_v5  ;;  %1936 = vmatprep.mubr.bf16.mxu0 %v6612_v29  ;;  %v5698_v5 = vld [vmem:[#allocation8 + $0x30] sm:$0xff]  }
 0x146   : > { %2035 = vmatprep.mubr.bf16.mxu1 %v6508_v12  ;;  %v5700_v12 = vld [vmem:[#allocation8 + $0xb0] sm:$0xff]  }
 0x14c   : > { %1937 = vmatmul.mubr.bf16.gmra.mxu0 %v6618_v47 }
 0x14d   : > { %2036 = vmatmul.mubr.bf16.gmra.mxu1 %v6518_v17  ;;  %2076 = vmatprep.mubr.bf16.mxu0 %v5821_v53  ;;  %v5703_v17 = vld [vmem:[#allocation8 + $0xe8] sm:$0xff]  }
 0x14e   : > { %2173 = vmatprep.mubr.bf16.mxu1 %v6523_v22  ;;  %v5702_v22 = vld [vmem:[#allocation8 + $0x28] sm:$0xff]  }
 0x14f   : > { %v5735_v53 = vld [vmem:[#allocation8 + $0x128] sm:$0xff]  }
 0x154   : > { %2077 = vmatmul.mubr.bf16.vlgmr.msra.gmra.mxu0 %v5822_v35 }
 0x155   : > { %2174 = vmatmul.mubr.bf16.vlgmr.msra.gmra.mxu1 %v6530_v26  ;;  %5009 = vmatpush3.bf16.msra.mxu0 %v5694_v59  ;;  %v5707_v26 = vld [vmem:[#allocation8 + $0xe0] sm:$0xff]   ;;  %v5736_v59 = vld [vmem:[#allocation8 + $0x1a8] sm:$0xff]  }
 0x156   : > { %5049 = vmatpush3.bf16.msra.mxu1 %v5696_v0  ;;  %2084 = vmatprep.mubr.bf16.mxu0 %v6406_v10  ;;  %v5706_v10 = vld [vmem:[#allocation8 + $0x20] sm:$0xff]   ;;  %v2319_v0 = vld [vmem:[%s6316_s23 + $0x108] sm:$0xff] }
 0x157   : > { %2181 = vmatprep.mubr.bf16.mxu1 %v6536_v31  ;;  %5010 = vmatprep.subr.bf16.mxu0 %v5697_v33  ;;  %v5708_v31 = vld [vmem:[#allocation8 + $0xa0] sm:$0xff]  }
 0x158   : > { %5050 = vmatprep.subr.bf16.mxu1 %v5699_v34 }
 0x159   : > { %5011 = vmatpush3.bf16.msra.mxu0 %v5698_v5  ;;  %v4637_v5 = vcombine.low %v2303_v25, %v2311_v8  ;;  %v5751_v25 = vld [vmem:[#allocation8 + $0x108] sm:$0xff]  }
 0x15a   : > { %5051 = vmatpush3.bf16.msra.mxu1 %v5700_v12  ;;  %5012 = vmatprep.subr.bf16.mxu0 %v5701_v36  ;;  %v2327_v12 = vld [vmem:[%s6316_s23 + $0x148] sm:$0xff]  ;;  %v5737_v36 = vld [vmem:[#allocation8 + $0x160] sm:$0xff]  }
 0x15b   : > { %5052 = vmatprep.subr.bf16.mxu1 %v5703_v17 }
 0x15c   : > { %2085 = vmatmul.mubr.bf16.gmra.mxu0 %v5823_v3 }
 0x15d   : > { %2182 = vmatmul.mubr.bf16.gmra.mxu1 %v6548_v40  ;;  %2092 = vmatprep.mubr.bf16.mxu0 %v6422_v21  ;;  %v5715_v40 = vld [vmem:[#allocation8 + $0xd0] sm:$0xff]  }
 0x15e   : > { %2189 = vmatprep.mubr.bf16.mxu1 %v6550_v41  ;;  %5013 = vmatpush3.bf16.msra.mxu0 %v5702_v22  ;;  %v5714_v21 = vld [vmem:[#allocation8 + $0x10] sm:$0xff]  }
 0x15f   : > { %5053 = vmatpush3.bf16.msra.mxu1 %v5704_v49  ;;  %5014 = vmatprep.subr.bf16.mxu0 %v5705_v37  ;;  %v5716_v41 = vld [vmem:[#allocation8 + $0x90] sm:$0xff]   ;;  %v5738_v49 = vld [vmem:[#allocation8 + $0x1e0] sm:$0xff]  }
 0x160   : > { %5054 = vmatprep.subr.bf16.mxu1 %v5707_v26  ;;  %v4654_v26 = vcombine.high %v2319_v0, %v2327_v12 }
 0x162   : > { %5015 = vmatpush3.bf16.msra.mxu0 %v5706_v10 }
 0x163   : > { %5055 = vmatpush3.bf16.msra.mxu1 %v5708_v31  ;;  %5016 = vmatprep.subr.bf16.mxu0 %v5709_v44  ;;  %v5739_v31 = vld [vmem:[#allocation8 + $0x120] sm:$0xff]  }
 0x164   : > { %5056 = vmatprep.subr.bf16.mxu1 %v5711_v45  ;;  %2093 = vmatmul.mubr.bf16.gmra.mxu0 %v5824_v52  ;;  %v5740_v44 = vld [vmem:[#allocation8 + $0x1a0] sm:$0xff]   ;;  %v5743_v52 = vld [vmem:[#allocation8 + $0x118] sm:$0xff]  }
 0x165   : > { %2190 = vmatmul.mubr.bf16.gmra.mxu1 %v6562_v50  ;;  %2100 = vmatprep.mubr.bf16.mxu0 %v6438_v32  ;;  %v5723_v50 = vld [vmem:[#allocation8 + $0xc0] sm:$0xff]  }
 0x166   : > { %2197 = vmatprep.mubr.bf16.mxu1 %v6565_v54  ;;  %5017 = vmatpush3.bf16.msra.mxu0 %v5710_v9  ;;  %v5722_v32 = vld [vmem:[#allocation8] sm:$0xff]  }
 0x167   : > { %5057 = vmatpush3.bf16.msra.mxu1 %v5712_v46  ;;  %5018 = vmatprep.subr.bf16.mxu0 %v5713_v48  ;;  %v5724_v54 = vld [vmem:[#allocation8 + $0x80] sm:$0xff]   ;;  %v5741_v46 = vld [vmem:[#allocation8 + $0x158] sm:$0xff]  }
 0x168   : > { %5058 = vmatprep.subr.bf16.mxu1 %v5715_v40  ;;  %v5742_v48 = vld [vmem:[#allocation8 + $0x1d8] sm:$0xff]   ;;  %v2334_v40 = vld [vmem:[%s6316_s23 + $0x180] sm:$0xff] }
 0x16a   : > { %5019 = vmatpush3.bf16.msra.mxu0 %v5714_v21  ;;  %v5744_v21 = vld [vmem:[#allocation8 + $0x198] sm:$0xff]  }
 0x16b   : > { %5059 = vmatpush3.bf16.msra.mxu1 %v5716_v41  ;;  %5020 = vmatprep.subr.bf16.mxu0 %v5717_v15  ;;  %v2342_v41 = vld [vmem:[%s6316_s23 + $0x1c0] sm:$0xff]  ;;  %v2335_v15 = vld [vmem:[%s6316_s23 + $0x188] sm:$0xff] }
 0x16c   : > { %5060 = vmatprep.subr.bf16.mxu1 %v5719_v56  ;;  %2101 = vmatmul.mubr.bf16.gmra.mxu0 %v6450_v39  ;;  %v2286_v39 = vld [vmem:[%s6316_s23] sm:$0xff] }
 0x16d   : > { %2198 = vmatmul.mubr.bf16.gmra.mxu1 %v6578_v63  ;;  %2108 = vmatprep.mubr.bf16.mxu0 %v6456_v43  ;;  %v2294_v43 = vld [vmem:[%s6316_s23 + $0x40] sm:$0xff] }
 0x16e   : > { %2205 = vmatprep.mubr.bf16.mxu1 %v6581_v4  ;;  %5021 = vmatpush3.bf16.msra.mxu0 %v5718_v57  ;;  %v2310_v63 = vld [vmem:[%s6316_s23 + $0xc0] sm:$0xff]  ;;  %v5728_v4 = vld [vmem:[#allocation8 + $0x1b8] sm:$0xff]   ;;  %v4619_v7 = vcombine.low %v2286_v39, %v2294_v43 }
 0x16f   : > { %5061 = vmatpush3.bf16.msra.mxu1 %v5720_v20  ;;  %5022 = vmatprep.subr.bf16.mxu0 %v5721_v58  ;;  %v4653_v58 = vcombine.low %v2319_v0, %v2327_v12 }
 0x170   : > { %5062 = vmatprep.subr.bf16.mxu1 %v5723_v50  ;;  %v2343_v50 = vld [vmem:[%s6316_s23 + $0x1c8] sm:$0xff] }
 0x172   : > { %5023 = vmatpush3.bf16.msra.mxu0 %v5722_v32  ;;  %v5745_v32 = vld [vmem:[#allocation8 + $0x150] sm:$0xff]  }
 0x173   : > { %5063 = vmatpush3.bf16.msra.mxu1 %v5724_v54  ;;  %5088 = vmatprep.subr.bf16.mxu0 %v5725_v60 }
 0x174   : > { %5128 = vmatprep.subr.bf16.mxu1 %v5726_v62  ;;  %2109 = vmatmul.mubr.bf16.gmra.mxu0 %v6469_v51  ;;  %v2287_v51 = vld [vmem:[%s6316_s23 + $0x8] sm:$0xff]  ;;  %v5746_v62 = vld [vmem:[#allocation8 + $0x1d0] sm:$0xff]  }
 0x175   : > { %2206 = vmatmul.mubr.bf16.gmra.mxu1 %v6594_v24  ;;  %2116 = vmatprep.mubr.bf16.mxu0 %v6475_v55  ;;  %v2295_v55 = vld [vmem:[%s6316_s23 + $0x48] sm:$0xff]  ;;  %v5732_v24 = vld [vmem:[#allocation8 + $0x1b0] sm:$0xff]  }
 0x176   : > { %2213 = vmatprep.mubr.bf16.mxu1 %v6596_v27  ;;  %v5733_v27 = vld [vmem:[#allocation8 + $0x168] sm:$0xff]  }
 0x17c   : > { %2117 = vmatmul.mubr.bf16.gmra.mxu0 %v6487_v61  ;;  %v4620_v61 = vcombine.high %v2286_v39, %v2294_v43  ;;  %v5747_v39 = vld [vmem:[#allocation8 + $0x110] sm:$0xff]   ;;  %v4668_v43 = vcombine.high %v2334_v40, %v2342_v41 }
 0x17d   : > { %2214 = vmatmul.mubr.bf16.gmra.mxu1 %v6602_v38  ;;  %2124 = vmatprep.mubr.bf16.mxu0 %v6493_v1  ;;  %v4622_v1 = vcombine.high %v2287_v51, %v2295_v55  ;;  %v5734_v38 = vld [vmem:[#allocation8 + $0x1e8] sm:$0xff]  }
 0x17e   : > { %2221 = vmatprep.mubr.bf16.mxu1 %v6604_v42 }
 0x184   : > { %2125 = vmatmul.mubr.bf16.gmra.mxu0 %v6503_v6  ;;  %v2302_v6 = vld [vmem:[%s6316_s23 + $0x80] sm:$0xff] }
 0x185   : > { %2222 = vmatmul.mubr.bf16.gmra.mxu1 %v6610_v28  ;;  %2132 = vmatprep.mubr.bf16.mxu0 %v6510_v13  ;;  %v4621_v13 = vcombine.low %v2287_v51, %v2295_v55  ;;  %v4636_v14 = vcombine.high %v2302_v6, %v2310_v63  ;;  %v4635_v35 = vcombine.low %v2302_v6, %v2310_v63  ;;  %v5749_v6 = vld [vmem:[#allocation8 + $0x148] sm:$0xff]  }
 0x186   : > { %2229 = vmatprep.mubr.bf16.mxu1 %v6612_v29  ;;  %v2318_v29 = vld [vmem:[%s6316_s23 + $0x100] sm:$0xff]  ;;  %v4670_v51 = vcombine.high %v2335_v15, %v2343_v50 }
 0x18c   : > { %2133 = vmatmul.mubr.bf16.gmra.mxu0 %v6520_v18 }
 0x18d   : > { %2230 = vmatmul.mubr.bf16.gmra.mxu1 %v6618_v47  ;;  %3726 = vmatprep.mubr.bf16.mxu0 %v4620_v61  ;;  %v2326_v47 = vld [vmem:[%s6316_s23 + $0x140] sm:$0xff] }
 0x18e   : > { %3791 = vmatprep.mubr.bf16.mxu1 %v4622_v1  ;;  %v4652_v37 = vcombine.high %v2318_v29, %v2326_v47  ;;  %v4651_v20 = vcombine.low %v2318_v29, %v2326_v47  ;;  %v5748_v1 = vld [vmem:[#allocation8 + $0x190] sm:$0xff]   ;;  %v5754_v47 = vld [vmem:[#allocation8 + $0x1c0] sm:$0xff]  }
 0x194   : > { %v6658_v19 = vpop.f32.mrf.mxu0  ;;  %3727 = vmatmul.mubr.bf16.vlgmr.msra.gmra.mxu0 %v4619_v7  ;;  %v5752_v7 = vld [vmem:[#allocation8 + $0x188] sm:$0xff]  }
 0x195   : > { %v6660_v18 = vpop.f32.mrf.mxu1  ;;  %3792 = vmatmul.mubr.bf16.vlgmr.msra.gmra.mxu1 %v4621_v13  ;;  %5089 = vmatpush3.bf16.msra.mxu0 %v5727_v2  ;;  %v2288_v13 = vld [vmem:[%s6316_s23 + $0x10] sm:$0xff] }
 0x196   : > { %5129 = vmatpush3.bf16.msra.mxu1 %v5728_v4  ;;  %v6662_v42 = vpop.f32.mrf.mxu0  ;;  %5090 = vmatprep.subr.bf16.mxu0 %v5729_v11  ;;  %v5750_v4 = vld [vmem:[#allocation8 + $0x1c8] sm:$0xff]  }
 0x197   : > { %v6664_v28 = vpop.f32.mrf.mxu1  ;;  %5130 = vmatprep.subr.bf16.mxu1 %v5730_v30  ;;  %3734 = vmatprep.mubr.bf16.mxu0 %v4636_v14  ;;  %v4667_v30 = vcombine.low %v2334_v40, %v2342_v41  ;;  %v4669_v14 = vcombine.low %v2335_v15, %v2343_v50  ;;  %v2313_v41 = vld [vmem:[%s6316_s23 + $0xd8] sm:$0xff] }
 0x198   : > { %3799 = vmatprep.mubr.bf16.mxu1 %v4638_v16  ;;  %v6669_v33 = vpop.f32.mrf.mxu0  ;;  %v2296_v16 = vld [vmem:[%s6316_s23 + $0x50] sm:$0xff]  ;;  %v5759_v15 = vld [vmem:[#allocation8 + $0x238] sm:$0xff]  }
 0x199   : > { %v6671_v34 = vpop.f32.mrf.mxu1  ;;  %5091 = vmatpush3.bf16.msra.mxu0 %v5731_v23  ;;  %v2289_v23 = vld [vmem:[%s6316_s23 + $0x18] sm:$0xff]  ;;  %v4624_v0 = vcombine.high %v2288_v13, %v2296_v16 }
 0x19a   : > { %5131 = vmatpush3.bf16.msra.mxu1 %v5732_v24  ;;  %v6674_v17 = vpop.f32.mrf.mxu0  ;;  %5092 = vmatprep.subr.bf16.mxu0 %v5733_v27  ;;  %v2297_v24 = vld [vmem:[%s6316_s23 + $0x58] sm:$0xff]  ;;  %v5753_v27 = vld [vmem:[#allocation8 + $0x140] sm:$0xff]  }
 0x19b   : > { %v6676_v22 = vpop.f32.mrf.mxu1  ;;  %5132 = vmatprep.subr.bf16.mxu1 %v5734_v38 }
 0x19c   : > { %v6678_v3 = vpop.f32.mrf.mxu0  ;;  %3735 = vmatmul.mubr.bf16.gmra.mxu0 %v4635_v35  ;;  %v4626_v35 = vcombine.high %v2289_v23, %v2297_v24 }
 0x19d   : > { %v6680_v10 = vpop.f32.mrf.mxu1  ;;  %3800 = vmatmul.mubr.bf16.gmra.mxu1 %v4637_v5  ;;  %5093 = vmatpush3.bf16.msra.mxu0 %v5735_v53  ;;  %v5755_v53 = vld [vmem:[#allocation8 + $0x100] sm:$0xff]  }
 0x19e   : > { %5133 = vmatpush3.bf16.msra.mxu1 %v5736_v59  ;;  %v6682_v45 = vpop.f32.mrf.mxu0  ;;  %5094 = vmatprep.subr.bf16.mxu0 %v5737_v36  ;;  %v5756_v59 = vld [vmem:[#allocation8 + $0x180] sm:$0xff]   ;;  %v5757_v36 = vld [vmem:[#allocation8 + $0x278] sm:$0xff]  }
 0x19f   : > { %v6684_v9 = vpop.f32.mrf.mxu1  ;;  %5134 = vmatprep.subr.bf16.mxu1 %v5738_v49  ;;  %3742 = vmatprep.mubr.bf16.mxu0 %v4652_v37  ;;  %v5758_v49 = vld [vmem:[#allocation8 + $0x2f8] sm:$0xff]  }
 0x1a0   : > { %3807 = vmatprep.mubr.bf16.mxu1 %v4654_v26  ;;  %v6689_v56 = vpop.f32.mrf.mxu0 }
 0x1a1   : > { %v6691_v57 = vpop.f32.mrf.mxu1  ;;  %5095 = vmatpush3.bf16.msra.mxu0 %v5739_v31  ;;  %v2304_v31 = vld [vmem:[%s6316_s23 + $0x90] sm:$0xff] }
 0x1a2   : > { %5135 = vmatpush3.bf16.msra.mxu1 %v5740_v44  ;;  %v6694_v54 = vpop.f32.mrf.mxu0  ;;  %5096 = vmatprep.subr.bf16.mxu0 %v5741_v46  ;;  %v2312_v44 = vld [vmem:[%s6316_s23 + $0xd0] sm:$0xff]  ;;  %v2305_v46 = vld [vmem:[%s6316_s23 + $0x98] sm:$0xff] }
 0x1a3   : > { %v6696_v60 = vpop.f32.mrf.mxu1  ;;  %5136 = vmatprep.subr.bf16.mxu1 %v5742_v48 }
 0x1a4   : > { %v6698_v55 = vpop.f32.mrf.mxu0  ;;  %3743 = vmatmul.mubr.bf16.gmra.mxu0 %v4651_v20  ;;  %v5760_v20 = vld [vmem:[#allocation8 + $0x2b8] sm:$0xff]  }
 0x1a5   : > { %v6700_v61 = vpop.f32.mrf.mxu1  ;;  %3808 = vmatmul.mubr.bf16.gmra.mxu1 %v4653_v58  ;;  %5097 = vmatpush3.bf16.msra.mxu0 %v5743_v52  ;;  %v4623_v52 = vcombine.low %v2288_v13, %v2296_v16  ;;  %v5765_v13 = vld [vmem:[#allocation8 + $0x268] sm:$0xff]  }
 0x1a6   : > { %5137 = vmatpush3.bf16.msra.mxu1 %v5744_v21  ;;  %v6702_v63 = vpop.f32.mrf.mxu0  ;;  %5098 = vmatprep.subr.bf16.mxu0 %v5745_v32  ;;  %v4625_v21 = vcombine.low %v2289_v23, %v2297_v24  ;;  %v5761_v32 = vld [vmem:[#allocation8 + $0x270] sm:$0xff]   ;;  %v4639_v24 = vcombine.low %v2304_v31, %v2312_v44 }
 0x1a7   : > { %v6704_v2 = vpop.f32.mrf.mxu1  ;;  %5138 = vmatprep.subr.bf16.mxu1 %v5746_v62  ;;  %3750 = vmatprep.mubr.bf16.mxu0 %v4668_v43  ;;  %v5762_v62 = vld [vmem:[#allocation8 + $0x2f0] sm:$0xff]   ;;  %v4642_v43 = vcombine.high %v2305_v46, %v2313_v41 }
 0x1a8   : > { %3815 = vmatprep.mubr.bf16.mxu1 %v4670_v51  ;;  %v6707_v8 = vpop.f32.mrf.mxu0 }
 0x1a9   : > { %v6709_v11 = vpop.f32.mrf.mxu1  ;;  %5099 = vmatpush3.bf16.msra.mxu0 %v5747_v39  ;;  %v4640_v39 = vcombine.high %v2304_v31, %v2312_v44  ;;  %v5771_v44 = vld [vmem:[#allocation8 + $0x220] sm:$0xff]  }
 0x1aa   : > { %5139 = vmatpush3.bf16.msra.mxu1 %v5748_v1  ;;  %v6714_v38 = vpop.f32.mrf.mxu0  ;;  %5100 = vmatprep.subr.bf16.mxu0 %v5749_v6  ;;  %v5763_v6 = vld [vmem:[#allocation8 + $0x230] sm:$0xff]  }
 0x1ab   : > { %v6716_v29 = vpop.f32.mrf.mxu1  ;;  %5140 = vmatprep.subr.bf16.mxu1 %v5750_v4  ;;  %v5764_v4 = vld [vmem:[#allocation8 + $0x2b0] sm:$0xff]  }
 0x1ac   : > { %v6718_v5 = vpop.f32.mrf.mxu0  ;;  %3751 = vmatmul.mubr.bf16.gmra.mxu0 %v4667_v30  ;;  %v5766_v30 = vld [vmem:[#allocation8 + $0x2e8] sm:$0xff]  }
 0x1ad   : > { %v6720_v12 = vpop.f32.mrf.mxu1  ;;  %3816 = vmatmul.mubr.bf16.gmra.mxu1 %v4669_v14  ;;  %5101 = vmatpush3.bf16.msra.mxu0 %v5751_v25  ;;  %v2320_v14 = vld [vmem:[%s6316_s23 + $0x110] sm:$0xff] }
 0x1ae   : > { %5141 = vmatpush3.bf16.msra.mxu1 %v5752_v7  ;;  %v6722_v37 = vpop.f32.mrf.mxu0  ;;  %5102 = vmatprep.subr.bf16.mxu0 %v5753_v27  ;;  %v4641_v27 = vcombine.low %v2305_v46, %v2313_v41  ;;  %v5772_v46 = vld [vmem:[#allocation8 + $0x2a0] sm:$0xff]  }
 0x1af   : > { %v6724_v26 = vpop.f32.mrf.mxu1  ;;  %5142 = vmatprep.subr.bf16.mxu1 %v5754_v47  ;;  %3856 = vmatprep.mubr.bf16.mxu0 %v4624_v0  ;;  %v2328_v47 = vld [vmem:[%s6316_s23 + $0x150] sm:$0xff]  ;;  %v5767_v0 = vld [vmem:[#allocation8 + $0x228] sm:$0xff]  }
 0x1b0   : > { %3921 = vmatprep.mubr.bf16.mxu1 %v4626_v35  ;;  %v6729_v48 = vpop.f32.mrf.mxu0  ;;  %v5768_v35 = vld [vmem:[#allocation8 + $0x2a8] sm:$0xff]  }
 0x1b1   : > { %v6731_v40 = vpop.f32.mrf.mxu1  ;;  %5103 = vmatpush3.bf16.msra.mxu0 %v5755_v53  ;;  %v2321_v53 = vld [vmem:[%s6316_s23 + $0x118] sm:$0xff] }
 0x1b2   : > { %5143 = vmatpush3.bf16.msra.mxu1 %v5756_v59  ;;  %v6734_v58 = vpop.f32.mrf.mxu0  ;;  %5168 = vmatprep.subr.bf16.mxu0 %v5757_v36  ;;  %v2329_v59 = vld [vmem:[%s6316_s23 + $0x158] sm:$0xff] }
 0x1b3   : > { %v6736_v50 = vpop.f32.mrf.mxu1  ;;  %5208 = vmatprep.subr.bf16.mxu1 %v5758_v49 }
 0x1b4   : > { %v6738_v51 = vpop.f32.mrf.mxu0  ;;  %3857 = vmatmul.mubr.bf16.vlgmr.msra.gmra.mxu0 %v4623_v52  ;;  %v5769_v52 = vld [vmem:[#allocation8 + $0x260] sm:$0xff]  }
 0x1b5   : > { %v6740_v1 = vpop.f32.mrf.mxu1  ;;  %3922 = vmatmul.mubr.bf16.vlgmr.msra.gmra.mxu1 %v4625_v21  ;;  %5169 = vmatpush3.bf16.msra.mxu0 %v5759_v15  ;;  %v5770_v21 = vld [vmem:[#allocation8 + $0x2e0] sm:$0xff]   ;;  %v4656_v15 = vcombine.high %v2320_v14, %v2328_v47 }
 0x1b6   : > { %5209 = vmatpush3.bf16.msra.mxu1 %v5760_v20  ;;  %v6742_v25 = vpop.f32.mrf.mxu0  ;;  %5170 = vmatprep.subr.bf16.mxu0 %v5761_v32  ;;  %v4658_v20 = vcombine.high %v2321_v53, %v2329_v59 }
 0x1b7   : > { %v6744_v7 = vpop.f32.mrf.mxu1  ;;  %5210 = vmatprep.subr.bf16.mxu1 %v5762_v62  ;;  %3864 = vmatprep.mubr.bf16.mxu0 %v4640_v39  ;;  %v5773_v39 = vld [vmem:[#allocation8 + $0x258] sm:$0xff]  }
 0x1b8   : > { %3929 = vmatprep.mubr.bf16.mxu1 %v4642_v43  ;;  %v6747_v16 = vpop.f32.mrf.mxu0  ;;  %v5774_v43 = vld [vmem:[#allocation8 + $0x2d8] sm:$0xff]  }
 0x1b9   : > { %v6749_v23 = vpop.f32.mrf.mxu1  ;;  %5171 = vmatpush3.bf16.msra.mxu0 %v5763_v6  ;;  %v2336_v6 = vld [vmem:[%s6316_s23 + $0x190] sm:$0xff] }
 0x1ba   : > { %5211 = vmatpush3.bf16.msra.mxu1 %v5764_v4  ;;  %v6754_v36 = vpop.f32.mrf.mxu0  ;;  %5172 = vmatprep.subr.bf16.mxu0 %v5765_v13 }
 0x1bb   : > { %v6756_v49 = vpop.f32.mrf.mxu1  ;;  %5212 = vmatprep.subr.bf16.mxu1 %v5766_v30  ;;  %v4655_v30 = vcombine.low %v2320_v14, %v2328_v47  ;;  %v5779_v47 = vld [vmem:[#allocation8 + $0x210] sm:$0xff]  }
 0x1bc   : > { %v6758_v32 = vpop.f32.mrf.mxu0  ;;  %3865 = vmatmul.mubr.bf16.gmra.mxu0 %v4639_v24  ;;  %v4657_v24 = vcombine.low %v2321_v53, %v2329_v59  ;;  %v5780_v53 = vld [vmem:[#allocation8 + $0x290] sm:$0xff]  }
 0x1bd   : > { %v6760_v31 = vpop.f32.mrf.mxu1  ;;  %3930 = vmatmul.mubr.bf16.gmra.mxu1 %v4641_v27  ;;  %5173 = vmatpush3.bf16.msra.mxu0 %v5767_v0  ;;  %v2344_v27 = vld [vmem:[%s6316_s23 + $0x1d0] sm:$0xff]  ;;  %v2337_v0 = vld [vmem:[%s6316_s23 + $0x198] sm:$0xff] }
 0x1be   : > { %7338 = vst [vmem:[#allocation25_spill] sm:$0xff] %v6760_v31  ;;  %5213 = vmatpush3.bf16.msra.mxu1 %v5768_v35  ;;  %v6762_v41 = vpop.f32.mrf.mxu0  ;;  %5174 = vmatprep.subr.bf16.mxu0 %v5769_v52  ;;  %v2345_v35 = vld [vmem:[%s6316_s23 + $0x1d8] sm:$0xff] }
 0x1bf   : > { %7339 = vst [vmem:[#allocation26_spill] sm:$0xff] %v6762_v41  ;;  %v6764_v62 = vpop.f32.mrf.mxu1  ;;  %5214 = vmatprep.subr.bf16.mxu1 %v5770_v21  ;;  %3872 = vmatprep.mubr.bf16.mxu0 %v4656_v15  ;;  %v5775_v41 = vld [vmem:[#allocation8 + $0x218] sm:$0xff]   ;;  %v5777_v15 = vld [vmem:[#allocation8 + $0x250] sm:$0xff]   ;;  %v4674_v31 = vcombine.high %v2337_v0, %v2345_v35 }
 0x1c0   : > { %7340 = vst [vmem:[#allocation27_spill] sm:$0xff] %v6764_v62  ;;  %3937 = vmatprep.mubr.bf16.mxu1 %v4658_v20  ;;  %v6767_v4 = vpop.f32.mrf.mxu0  ;;  %v5776_v62 = vld [vmem:[#allocation8 + $0x298] sm:$0xff]   ;;  %v5778_v20 = vld [vmem:[#allocation8 + $0x2d0] sm:$0xff]  }
 0x1c1   : > { %7341 = vst [vmem:[#allocation28_spill] sm:$0xff] %v6767_v4  ;;  %v6769_v13 = vpop.f32.mrf.mxu1  ;;  %5175 = vmatpush3.bf16.msra.mxu0 %v5771_v44  ;;  %v4672_v4 = vcombine.high %v2336_v6, %v2344_v27 }
 0x1c2   : > { %7342 = vst [vmem:[#allocation29_spill] sm:$0xff] %v6769_v13  ;;  %5215 = vmatpush3.bf16.msra.mxu1 %v5772_v46  ;;  %v6774_v52 = vpop.f32.mrf.mxu0  ;;  %5176 = vmatprep.subr.bf16.mxu0 %v5773_v39  ;;  %v5781_v46 = vld [vmem:[#allocation8 + $0x248] sm:$0xff]  }
 0x1c3   : > { %7343 = vst [vmem:[#allocation30_spill] sm:$0xff] %v6774_v52  ;;  %v6776_v21 = vpop.f32.mrf.mxu1  ;;  %5216 = vmatprep.subr.bf16.mxu1 %v5774_v43  ;;  %v5782_v39 = vld [vmem:[#allocation8 + $0x2c8] sm:$0xff]   ;;  %v2290_v43 = vld [vmem:[%s6316_s23 + $0x20] sm:$0xff] }
 0x1c4   : > { %7344 = vst [vmem:[#allocation31_spill] sm:$0xff] %v6776_v21  ;;  %v6778_v13 = vpop.f32.mrf.mxu0  ;;  %3873 = vmatmul.mubr.bf16.gmra.mxu0 %v4655_v30  ;;  %v2299_v21 = vld [vmem:[%s6316_s23 + $0x68] sm:$0xff] }
 0x1c5   : > { %7345 = vst [vmem:[#allocation32_spill] sm:$0xff] %v6778_v13  ;;  %v6780_v14 = vpop.f32.mrf.mxu1  ;;  %3938 = vmatmul.mubr.bf16.gmra.mxu1 %v4657_v24  ;;  %5177 = vmatpush3.bf16.msra.mxu0 %v5775_v41  ;;  %v4673_v24 = vcombine.low %v2337_v0, %v2345_v35  ;;  %v2291_v13 = vld [vmem:[%s6316_s23 + $0x28] sm:$0xff]  ;;  %v5788_v0 = vld [vmem:[#allocation8 + $0x280] sm:$0xff]  }
 0x1c6   : > { %7346 = vst [vmem:[#allocation33_spill] sm:$0xff] %v6780_v14  ;;  %5217 = vmatpush3.bf16.msra.mxu1 %v5776_v62  ;;  %v6782_v59 = vpop.f32.mrf.mxu0  ;;  %5178 = vmatprep.subr.bf16.mxu0 %v5777_v15  ;;  %v4671_v62 = vcombine.low %v2336_v6, %v2344_v27  ;;  %v2298_v14 = vld [vmem:[%s6316_s23 + $0x60] sm:$0xff]  ;;  %v4630_v52 = vcombine.high %v2291_v13, %v2299_v21 }
 0x1c7   : > { %7347 = vst [vmem:[#allocation34_spill] sm:$0xff] %v6782_v59  ;;  %v6784_v44 = vpop.f32.mrf.mxu1  ;;  %5218 = vmatprep.subr.bf16.mxu1 %v5778_v20  ;;  %3880 = vmatprep.mubr.bf16.mxu0 %v4672_v4  ;;  %v5783_v59 = vld [vmem:[#allocation8 + $0x208] sm:$0xff]   ;;  %v5786_v4 = vld [vmem:[#allocation8 + $0x2c0] sm:$0xff]  }
 0x1c8   : > { %7348 = vst [vmem:[#allocation35_spill] sm:$0xff] %v6784_v44  ;;  %3945 = vmatprep.mubr.bf16.mxu1 %v4674_v31  ;;  %v6787_v30 = vpop.f32.mrf.mxu0  ;;  %v5784_v44 = vld [vmem:[#allocation8 + $0x288] sm:$0xff]   ;;  %v5785_v31 = vld [vmem:[#allocation8 + $0x240] sm:$0xff]  }
 0x1c9   : > { %7349 = vst [vmem:[#allocation36_spill] sm:$0xff] %v6787_v30  ;;  %v6789_v41 = vpop.f32.mrf.mxu1  ;;  %5179 = vmatpush3.bf16.msra.mxu0 %v5779_v47  ;;  %v4628_v30 = vcombine.high %v2290_v43, %v2298_v14  ;;  %v5787_v27 = vld [vmem:[#allocation8 + $0x200] sm:$0xff]  }
 0x1ca   : > { %7350 = vst [vmem:[#allocation37_spill] sm:$0xff] %v6789_v41  ;;  %5219 = vmatpush3.bf16.msra.mxu1 %v5780_v53  ;;  %v6794_v15 = vpop.f32.mrf.mxu0  ;;  %5180 = vmatprep.subr.bf16.mxu0 %v5781_v46  ;;  %v5789_v53 = vld [vmem:[#allocation8 + $0x378] sm:$0xff]  }
 0x1cb   : > { %v6796_v20 = vpop.f32.mrf.mxu1  ;;  %5220 = vmatprep.subr.bf16.mxu1 %v5782_v39  ;;  %v5790_v46 = vld [vmem:[#allocation8 + $0x3f8] sm:$0xff]   ;;  %v6807_v39 = vld [vmem:[%s6316_s23 + $0xa0] sm:$0xff] }
 0x1cc   : > { %v6798_v41 = vpop.f32.mrf.mxu0  ;;  %3881 = vmatmul.mubr.bf16.gmra.mxu0 %v4671_v62  ;;  %v4627_v62 = vcombine.low %v2290_v43, %v2298_v14  ;;  %v5794_v14 = vld [vmem:[#allocation8 + $0x3f0] sm:$0xff]  }
 0x1cd   : > { %v6800_v6 = vpop.f32.mrf.mxu1  ;;  %3946 = vmatmul.mubr.bf16.gmra.mxu1 %v4673_v24  ;;  %5181 = vmatpush3.bf16.msra.mxu0 %v5783_v59  ;;  %v4629_v24 = vcombine.low %v2291_v13, %v2299_v21  ;;  %v1756_v13 = vadd.f32 %v6660_v18, %v6658_v19  ;;  %v5795_v19 = vld [vmem:[#allocation8 + $0x330] sm:$0xff]  }
 0x1ce   : > { %7351 = vst [vmem:[#allocation38_spill] sm:$0xff] %v6800_v6  ;;  %5221 = vmatpush3.bf16.msra.mxu1 %v5784_v44  ;;  %v6802_v35 = vpop.f32.mrf.mxu0  ;;  %5182 = vmatprep.subr.bf16.mxu0 %v5785_v31  ;;  %v6815_v6 = vld [vmem:[%s6316_s23 + $0xe0] sm:$0xff]  ;;  %v5791_v31 = vld [vmem:[#allocation8 + $0x338] sm:$0xff]   ;;  %v5796_v18 = vld [vmem:[#allocation8 + $0x3b0] sm:$0xff]  }
 0x1cf   : > { %7352 = vst [vmem:[#allocation39_spill] sm:$0xff] %v6802_v35  ;;  %v6804_v47 = vpop.f32.mrf.mxu1  ;;  %5222 = vmatprep.subr.bf16.mxu1 %v5786_v4  ;;  %3986 = vmatprep.mubr.bf16.mxu0 %v4628_v30  ;;  %v6818_v35 = vld [vmem:[%s6316_s23 + $0xa8] sm:$0xff]  ;;  %v5792_v30 = vld [vmem:[#allocation8 + $0x3b8] sm:$0xff]   ;;  %v4644_v21 = vcombine.high %v6807_v39, %v6815_v6 }
 0x1d0   : > { %7353 = vst [vmem:[#allocation40_spill] sm:$0xff] %v6804_v47  ;;  %4051 = vmatprep.mubr.bf16.mxu1 %v4630_v52  ;;  %v6809_v59 = vpop.f32.mrf.mxu0  ;;  %v6821_v47 = vld [vmem:[%s6316_s23 + $0xe8] sm:$0xff] }
 0x1d1   : > { %v6811_v44 = vpop.f32.mrf.mxu1  ;;  %5183 = vmatpush3.bf16.msra.mxu0 %v5787_v27  ;;  %v4646_v43 = vcombine.high %v6818_v35, %v6821_v47 }
 0x1d2   : > { %7354 = vst [vmem:[#allocation41_spill] sm:$0xff] %v6811_v44  ;;  %5223 = vmatpush3.bf16.msra.mxu1 %v5788_v0  ;;  %v6823_v52 = vpop.f32.mrf.mxu0  ;;  %5248 = vmatprep.subr.bf16.mxu0 %v5789_v53  ;;  %v5793_v44 = vld [vmem:[#allocation8 + $0x370] sm:$0xff]   ;;  %v1758_v53 = vadd.f32 %v6664_v28, %v6662_v42  ;;  %v6847_v28 = vld [vmem:[%s6316_s23 + $0x120] sm:$0xff] }
 0x1d3   : > { %7355 = vst [vmem:[#allocation42_spill] sm:$0xff] %v6823_v52  ;;  %v6825_v4 = vpop.f32.mrf.mxu1  ;;  %5288 = vmatprep.subr.bf16.mxu1 %v5790_v46 }
 0x1d4   : > { %7356 = vst [vmem:[#allocation43_spill] sm:$0xff] %v6825_v4  ;;  %v1868_v27 = vpop.f32.mrf.mxu0  ;;  %3987 = vmatmul.mubr.bf16.vlgmr.msra.gmra.mxu0 %v4627_v62  ;;  %v5798_v62 = vld [vmem:[#allocation8 + $0x3e8] sm:$0xff]  }
 0x1d5   : > { %v6833_v0 = vpop.f32.mrf.mxu1  ;;  %4052 = vmatmul.mubr.bf16.vlgmr.msra.gmra.mxu1 %v4629_v24  ;;  %v1869_v46 = vadd.f32 %v1868_v27, %v1756_v13  ;;  %5249 = vmatpush3.bf16.msra.mxu0 %v5791_v31  ;;  %v1760_v24 = vadd.f32 %v6671_v34, %v6669_v33  ;;  %v4645_v33 = vcombine.low %v6818_v35, %v6821_v47  ;;  %v6856_v34 = vld [vmem:[%s6316_s23 + $0x160] sm:$0xff]  ;;  %v6862_v13 = vld [vmem:[%s6316_s23 + $0x168] sm:$0xff] }
 0x1d6   : > { %7357 = vst [vmem:[#allocation44_spill] sm:$0xff] %v6833_v0  ;;  %5289 = vmatpush3.bf16.msra.mxu1 %v5792_v30  ;;  %v1870_v4 = vpop.f32.mrf.mxu0  ;;  %5250 = vmatprep.subr.bf16.mxu0 %v5793_v44  ;;  %v5797_v0 = vld [vmem:[#allocation8 + $0x368] sm:$0xff]   ;;  %v4643_v30 = vcombine.low %v6807_v39, %v6815_v6  ;;  %v5801_v35 = vld [vmem:[#allocation8 + $0x360] sm:$0xff]  }
 0x1d7   : > { %v6837_v52 = vpop.f32.mrf.mxu1  ;;  %5290 = vmatprep.subr.bf16.mxu1 %v5794_v14  ;;  %2238 = vst [vmem:[%s6843_s29] sm:$0xff] %v1869_v46  ;;  %v1871_v42 = vadd.f32 %v1870_v4, %v1758_v53  ;;  %3994 = vmatprep.mubr.bf16.mxu0 %v4644_v21  ;;  %v6859_v14 = vld [vmem:[%s6316_s23 + $0x128] sm:$0xff]  ;;  %v1762_v4 = vadd.f32 %v6676_v22, %v6674_v17  ;;  %v5802_v47 = vld [vmem:[#allocation8 + $0x3e0] sm:$0xff]  }
 0x1d8   : > { %4059 = vmatprep.mubr.bf16.mxu1 %v4646_v43  ;;  %v1872_v44 = vpop.f32.mrf.mxu0  ;;  %v5799_v43 = vld [vmem:[#allocation8 + $0x328] sm:$0xff]   ;;  %v1766_v53 = vadd.f32 %v6680_v10, %v6678_v3  ;;  %v4660_v17 = vcombine.high %v6847_v28, %v6856_v34  ;;  %v4662_v22 = vcombine.high %v6859_v14, %v6862_v13  ;;  %v5803_v3 = vld [vmem:[#allocation8 + $0x320] sm:$0xff]  }
 0x1d9   : > { %v6849_v31 = vpop.f32.mrf.mxu1  ;;  %2239 = vst [vmem:[%s6843_s29 + $0x8] sm:$0xff] %v1871_v42  ;;  %v1873_v21 = vadd.f32 %v1872_v44, %v1760_v24  ;;  %5251 = vmatpush3.bf16.msra.mxu0 %v5795_v19  ;;  %v5800_v27 = vld [vmem:[#allocation8 + $0x3a8] sm:$0xff]   ;;  %v5804_v10 = vld [vmem:[#allocation8 + $0x3a0] sm:$0xff]   ;;  %v5805_v44 = vld [vmem:[#allocation8 + $0x358] sm:$0xff]  }
 0x1da   : > { %5291 = vmatpush3.bf16.msra.mxu1 %v5796_v18  ;;  %v1874_v6 = vpop.f32.mrf.mxu0  ;;  %5252 = vmatprep.subr.bf16.mxu0 %v5797_v0  ;;  %v1768_v0 = vadd.f32 %v6684_v9, %v6682_v45  ;;  %v1770_v45 = vadd.f32 %v6691_v57, %v6689_v56  ;;  %v6902_v56 = vld [vmem:[%s6316_s23 + $0x1e8] sm:$0xff]  ;;  %v1772_v57 = vadd.f32 %v6696_v60, %v6694_v54 }
 0x1db   : > { %v6867_v39 = vpop.f32.mrf.mxu1  ;;  %5292 = vmatprep.subr.bf16.mxu1 %v5798_v62  ;;  %2241 = vst [vmem:[%s6843_s29 + $0x18] sm:$0xff] %v1873_v21  ;;  %v1875_v46 = vadd.f32 %v1874_v6, %v1762_v4  ;;  %v6896_v6 = vld [vmem:[%s6316_s23 + $0x1e0] sm:$0xff] }
 0x1dc   : > { %v1878_v19 = vpop.f32.mrf.mxu0  ;;  %3995 = vmatmul.mubr.bf16.gmra.mxu0 %v4643_v30  ;;  %v5806_v30 = vld [vmem:[#allocation8 + $0x3d8] sm:$0xff]  }
 0x1dd   : > { %v6876_v18 = vpop.f32.mrf.mxu1  ;;  %4060 = vmatmul.mubr.bf16.gmra.mxu1 %v4645_v33  ;;  %2242 = vst [vmem:[%s6843_s29 + $0x20] sm:$0xff] %v1875_v46  ;;  %v1879_v62 = vadd.f32 %v1878_v19, %v1766_v53  ;;  %5253 = vmatpush3.bf16.msra.mxu0 %v5799_v43  ;;  %v6887_v33 = vld [vmem:[%s6316_s23 + $0x1a0] sm:$0xff]  ;;  %v4659_v43 = vcombine.low %v6847_v28, %v6856_v34  ;;  %v5807_v53 = vld [vmem:[#allocation8 + $0x318] sm:$0xff]  }
 0x1de   : > { %5293 = vmatpush3.bf16.msra.mxu1 %v5800_v27  ;;  %v1880_v24 = vpop.f32.mrf.mxu0  ;;  %5254 = vmatprep.subr.bf16.mxu0 %v5801_v35  ;;  %v4661_v27 = vcombine.low %v6859_v14, %v6862_v13  ;;  %v6899_v35 = vld [vmem:[%s6316_s23 + $0x1a8] sm:$0xff]  ;;  %v5808_v46 = vld [vmem:[#allocation8 + $0x398] sm:$0xff]   ;;  %v5809_v14 = vld [vmem:[#allocation8 + $0x350] sm:$0xff]   ;;  %v4676_v54 = vcombine.high %v6887_v33, %v6896_v6 }
 0x1df   : > { %v6881_v42 = vpop.f32.mrf.mxu1  ;;  %5294 = vmatprep.subr.bf16.mxu1 %v5802_v47  ;;  %2244 = vst [vmem:[%s6843_s29 + $0x30] sm:$0xff] %v1879_v62  ;;  %v1881_v9 = vadd.f32 %v1880_v24, %v1768_v0  ;;  %4002 = vmatprep.mubr.bf16.mxu0 %v4660_v17  ;;  %v5810_v13 = vld [vmem:[#allocation8 + $0x3d0] sm:$0xff]   ;;  %v1776_v17 = vadd.f32 %v6700_v61, %v6698_v55 }
 0x1e0   : > { %4067 = vmatprep.mubr.bf16.mxu1 %v4662_v22  ;;  %v1882_v4 = vpop.f32.mrf.mxu0  ;;  %v4678_v60 = vcombine.high %v6899_v35, %v6902_v56  ;;  %v1778_v62 = vadd.f32 %v6704_v2, %v6702_v63  ;;  %v5811_v55 = vld [vmem:[#allocation8 + $0x310] sm:$0xff]   ;;  %v1780_v63 = vadd.f32 %v6709_v11, %v6707_v8  ;;  %v2301_v8 = vld [vmem:[%s6316_s23 + $0x78] sm:$0xff]  ;;  %v1782_v11 = vadd.f32 %v6716_v29, %v6714_v38 }
 0x1e1   : > { %v6889_v21 = vpop.f32.mrf.mxu1  ;;  %2245 = vst [vmem:[%s6843_s29 + $0x38] sm:$0xff] %v1881_v9  ;;  %v1883_v47 = vadd.f32 %v1882_v4, %v1770_v45  ;;  %5255 = vmatpush3.bf16.msra.mxu0 %v5803_v3  ;;  %v5812_v61 = vld [vmem:[#allocation8 + $0x390] sm:$0xff]  }
 0x1e2   : > { %5295 = vmatpush3.bf16.msra.mxu1 %v5804_v10  ;;  %v1884_v28 = vpop.f32.mrf.mxu0  ;;  %5256 = vmatprep.subr.bf16.mxu0 %v5805_v44  ;;  %v5813_v44 = vld [vmem:[#allocation8 + $0x348] sm:$0xff]   ;;  %v6927_v45 = vld [vmem:[%s6316_s23 + $0x30] sm:$0xff] }
 0x1e3   : > { %v6907_v34 = vpop.f32.mrf.mxu1  ;;  %5296 = vmatprep.subr.bf16.mxu1 %v5806_v30  ;;  %2247 = vst [vmem:[%s6843_s29 + $0x48] sm:$0xff] %v1883_v47  ;;  %v1885_v22 = vadd.f32 %v1884_v28, %v1772_v57  ;;  %v5814_v30 = vld [vmem:[#allocation8 + $0x3c8] sm:$0xff]   ;;  %v6936_v57 = vld [vmem:[%s6316_s23 + $0x70] sm:$0xff]  ;;  %v6939_v47 = vld [vmem:[%s6316_s23 + $0x38] sm:$0xff] }
 0x1e4   : > { %v1888_v19 = vpop.f32.mrf.mxu0  ;;  %4003 = vmatmul.mubr.bf16.gmra.mxu0 %v4659_v43  ;;  %v4675_v43 = vcombine.low %v6887_v33, %v6896_v6  ;;  %v5816_v28 = vld [vmem:[#allocation8 + $0x388] sm:$0xff]   ;;  %v5817_v6 = vld [vmem:[#allocation8 + $0x340] sm:$0xff]   ;;  %v4632_v29 = vcombine.high %v6927_v45, %v6936_v57 }
 0x1e5   : > { %v6916_v0 = vpop.f32.mrf.mxu1  ;;  %4068 = vmatmul.mubr.bf16.gmra.mxu1 %v4661_v27  ;;  %2248 = vst [vmem:[%s6843_s29 + $0x50] sm:$0xff] %v1885_v22  ;;  %v1889_v3 = vadd.f32 %v1888_v19, %v1776_v17  ;;  %5257 = vmatpush3.bf16.msra.mxu0 %v5807_v53  ;;  %v4677_v27 = vcombine.low %v6899_v35, %v6902_v56  ;;  %v5818_v35 = vld [vmem:[#allocation8 + $0x3c0] sm:$0xff]   ;;  %v6959_v19 = vld [vmem:[%s6316_s23 + $0xb0] sm:$0xff] }
 0x1e6   : > { %5297 = vmatpush3.bf16.msra.mxu1 %v5808_v46  ;;  %v1890_v10 = vpop.f32.mrf.mxu0  ;;  %5258 = vmatprep.subr.bf16.mxu0 %v5809_v14  ;;  %v5815_v46 = vld [vmem:[#allocation8 + $0x308] sm:$0xff]   ;;  %v1786_v56 = vadd.f32 %v6720_v12, %v6718_v5  ;;  %v5819_v12 = vld [vmem:[#allocation8 + $0x300] sm:$0xff]  }
 0x1e7   : > { %v6921_v24 = vpop.f32.mrf.mxu1  ;;  %5298 = vmatprep.subr.bf16.mxu1 %v5810_v13  ;;  %2250 = vst [vmem:[%s6843_s29 + $0x60] sm:$0xff] %v1889_v3  ;;  %v1891_v2 = vadd.f32 %v1890_v10, %v1778_v62  ;;  %4010 = vmatprep.mubr.bf16.mxu0 %v4676_v54  ;;  %v4634_v13 = vcombine.high %v6939_v47, %v2301_v8  ;;  %v2317_v10 = vld [vmem:[%s6316_s23 + $0xf8] sm:$0xff] }
 0x1e8   : > { %4075 = vmatprep.mubr.bf16.mxu1 %v4678_v60  ;;  %v1892_v9 = vpop.f32.mrf.mxu0  ;;  %v1788_v54 = vadd.f32 %v6724_v26, %v6722_v37  ;;  %v5820_v60 = vld [vmem:[#allocation8 + $0x380] sm:$0xff]   ;;  %v1790_v37 = vadd.f32 %v6731_v40, %v6729_v48 }
 0x1e9   : > { %v6929_v4 = vpop.f32.mrf.mxu1  ;;  %2251 = vst [vmem:[%s6843_s29 + $0x68] sm:$0xff] %v1891_v2  ;;  %v1893_v53 = vadd.f32 %v1892_v9, %v1780_v63  ;;  %5259 = vmatpush3.bf16.msra.mxu0 %v5811_v55  ;;  %v2316_v55 = vld [vmem:[%s6316_s23 + $0xf0] sm:$0xff]  ;;  %v4631_v2 = vcombine.low %v6927_v45, %v6936_v57  ;;  %v4633_v9 = vcombine.low %v6939_v47, %v2301_v8 }
 0x1ea   : > { %5299 = vmatpush3.bf16.msra.mxu1 %v5812_v61  ;;  %v1894_v14 = vpop.f32.mrf.mxu0  ;;  %5260 = vmatprep.subr.bf16.mxu0 %v5813_v44  ;;  %v2309_v61 = vld [vmem:[%s6316_s23 + $0xb8] sm:$0xff]  ;;  %v1792_v44 = vadd.f32 %v6736_v50, %v6734_v58  ;;  %v4648_v48 = vcombine.high %v6959_v19, %v2316_v55  ;;  %v1796_v58 = vadd.f32 %v6740_v1, %v6738_v51 }
 0x1eb   : > { %v6945_v33 = vpop.f32.mrf.mxu1  ;;  %5300 = vmatprep.subr.bf16.mxu1 %v5814_v30  ;;  %2253 = vst [vmem:[%s6843_s29 + $0x78] sm:$0xff] %v1893_v53  ;;  %v1895_v38 = vadd.f32 %v1894_v14, %v1782_v11  ;;  %v4650_v40 = vcombine.high %v2309_v61, %v2317_v10  ;;  %v1798_v47 = vadd.f32 %v6744_v7, %v6742_v25  ;;  %v2324_v53 = vld [vmem:[%s6316_s23 + $0x130] sm:$0xff]  ;;  %v2333_v14 = vld [vmem:[%s6316_s23 + $0x178] sm:$0xff] }
 0x1ec   : > { %v1898_v17 = vpop.f32.mrf.mxu0  ;;  %4011 = vmatmul.mubr.bf16.gmra.mxu0 %v4675_v43  ;;  %v4647_v7 = vcombine.low %v6959_v19, %v2316_v55 }
 0x1ed   : > { %v6953_v22 = vpop.f32.mrf.mxu1  ;;  %4076 = vmatmul.mubr.bf16.gmra.mxu1 %v4677_v27  ;;  %2254 = vst [vmem:[%s6843_s29 + $0x80] sm:$0xff] %v1895_v38  ;;  %v1899_v5 = vadd.f32 %v1898_v17, %v1786_v56  ;;  %5261 = vmatpush3.bf16.msra.mxu0 %v5815_v46  ;;  %v2332_v46 = vld [vmem:[%s6316_s23 + $0x170] sm:$0xff]  ;;  %v4649_v38 = vcombine.low %v2309_v61, %v2317_v10 }
 0x1ee   : > { %5301 = vmatpush3.bf16.msra.mxu1 %v5816_v28  ;;  %v1900_v62 = vpop.f32.mrf.mxu0  ;;  %5262 = vmatprep.subr.bf16.mxu0 %v5817_v6  ;;  %v2325_v28 = vld [vmem:[%s6316_s23 + $0x138] sm:$0xff]  ;;  %v1800_v6 = vadd.f32 %v6749_v23, %v6747_v16  ;;  %v4664_v17 = vcombine.high %v2324_v53, %v2332_v46  ;;  %v7358_v16 = vld [vmem:[#allocation25_spill] sm:$0xff]  ;;  %v2340_v10 = vld [vmem:[%s6316_s23 + $0x1b0] sm:$0xff] }
 0x1ef   : > { %v6961_v3 = vpop.f32.mrf.mxu1  ;;  %5302 = vmatprep.subr.bf16.mxu1 %v5818_v35  ;;  %2256 = vst [vmem:[%s6843_s29 + $0x90] sm:$0xff] %v1899_v5  ;;  %v1901_v26 = vadd.f32 %v1900_v62, %v1788_v54  ;;  %4116 = vmatprep.mubr.bf16.mxu0 %v4632_v29  ;;  %v1802_v29 = vadd.f32 %v6756_v49, %v6754_v36  ;;  %v7359_v36 = vld [vmem:[#allocation26_spill] sm:$0xff]  ;;  %v7360_v49 = vld [vmem:[#allocation27_spill] sm:$0xff] }
 0x1f0   : > { %4181 = vmatprep.mubr.bf16.mxu1 %v4634_v13  ;;  %v1902_v30 = vpop.f32.mrf.mxu0  ;;  %v4666_v54 = vcombine.high %v2325_v28, %v2333_v14  ;;  %v1806_v23 = vadd.f32 %v7358_v16, %v6758_v32  ;;  %v1808_v55 = vadd.f32 %v7360_v49, %v7359_v36 }
 0x1f1   : > { %v6971_v63 = vpop.f32.mrf.mxu1  ;;  %2257 = vst [vmem:[%s6843_s29 + $0x98] sm:$0xff] %v1901_v26  ;;  %v1903_v43 = vadd.f32 %v1902_v30, %v1790_v37  ;;  %5263 = vmatpush3.bf16.msra.mxu0 %v5819_v12  ;;  %v2348_v26 = vld [vmem:[%s6316_s23 + $0x1f0] sm:$0xff]  ;;  %v2349_v30 = vld [vmem:[%s6316_s23 + $0x1f8] sm:$0xff] }
 0x1f2   : > { %5303 = vmatpush3.bf16.msra.mxu1 %v5820_v60  ;;  %v1904_v27 = vpop.f32.mrf.mxu0 }
 0x1f3   : > { %v6978_v11 = vpop.f32.mrf.mxu1  ;;  %2259 = vst [vmem:[%s6843_s29 + $0xa8] sm:$0xff] %v1903_v43  ;;  %v1905_v50 = vadd.f32 %v1904_v27, %v1792_v44  ;;  %v2341_v44 = vld [vmem:[%s6316_s23 + $0x1b8] sm:$0xff] }
 0x1f4   : > { %v1908_v45 = vpop.f32.mrf.mxu0  ;;  %4117 = vmatmul.mubr.bf16.vlgmr.msra.gmra.mxu0 %v4631_v2  ;;  %v7361_v2 = vld [vmem:[#allocation28_spill] sm:$0xff] }
 0x1f5   : > { %v6983_v57 = vpop.f32.mrf.mxu1  ;;  %4182 = vmatmul.mubr.bf16.vlgmr.msra.gmra.mxu1 %v4633_v9  ;;  %2260 = vst [vmem:[%s6843_s29 + $0xb0] sm:$0xff] %v1905_v50  ;;  %v1909_v8 = vadd.f32 %v1908_v45, %v1796_v58  ;;  %4124 = vmatprep.mubr.bf16.mxu0 %v4648_v48  ;;  %v7362_v9 = vld [vmem:[#allocation29_spill] sm:$0xff]  ;;  %v4663_v58 = vcombine.low %v2324_v53, %v2332_v46  ;;  %v7363_v45 = vld [vmem:[#allocation30_spill] sm:$0xff] }
 0x1f6   : > { %4189 = vmatprep.mubr.bf16.mxu1 %v4650_v40  ;;  %v1910_v51 = vpop.f32.mrf.mxu0  ;;  %v1810_v43 = vadd.f32 %v7362_v9, %v7361_v2  ;;  %v4665_v50 = vcombine.low %v2325_v28, %v2333_v14  ;;  %v7367_v46 = vld [vmem:[#allocation34_spill] sm:$0xff]  ;;  %v7368_v28 = vld [vmem:[#allocation35_spill] sm:$0xff]  ;;  %v4681_v2 = vcombine.low %v2341_v44, %v2349_v30  ;;  %v1822_v9 = vadd.f32 %v6796_v20, %v6794_v15 }
 0x1f7   : > { %v6989_v1 = vpop.f32.mrf.mxu1  ;;  %2262 = vst [vmem:[%s6843_s29 + $0xc0] sm:$0xff] %v1909_v8  ;;  %v1911_v35 = vadd.f32 %v1910_v51, %v1798_v47  ;;  %v7364_v47 = vld [vmem:[#allocation31_spill] sm:$0xff]  ;;  %v1818_v14 = vadd.f32 %v7368_v28, %v7367_v46 }
 0x1f8   : > { %v1912_v56 = vpop.f32.mrf.mxu0  ;;  %v1812_v8 = vadd.f32 %v7364_v47, %v7363_v45 }
 0x1f9   : > { %v6997_v25 = vpop.f32.mrf.mxu1  ;;  %2263 = vst [vmem:[%s6843_s29 + $0xc8] sm:$0xff] %v1911_v35  ;;  %v1913_v13 = vadd.f32 %v1912_v56, %v1800_v6  ;;  %v4680_v6 = vcombine.high %v2340_v10, %v2348_v26  ;;  %v4682_v35 = vcombine.high %v2341_v44, %v2349_v30 }
 0x1fa   : > { %v1914_v5 = vpop.f32.mrf.mxu0 }
 0x1fb   : > { %v7003_v12 = vpop.f32.mrf.mxu1  ;;  %2265 = vst [vmem:[%s6843_s29 + $0xd8] sm:$0xff] %v1913_v13  ;;  %v1915_v60 = vadd.f32 %v1914_v5, %v1802_v29  ;;  %v7366_v29 = vld [vmem:[#allocation33_spill] sm:$0xff] }
 0x1fc   : > { %v1918_v19 = vpop.f32.mrf.mxu0  ;;  %4125 = vmatmul.mubr.bf16.gmra.mxu0 %v4647_v7 }
 0x1fd   : > { %v7008_v62 = vpop.f32.mrf.mxu1  ;;  %4190 = vmatmul.mubr.bf16.gmra.mxu1 %v4649_v38  ;;  %2266 = vst [vmem:[%s6843_s29 + $0xe0] sm:$0xff] %v1915_v60  ;;  %v1919_v61 = vadd.f32 %v1918_v19, %v1806_v23  ;;  %4132 = vmatprep.mubr.bf16.mxu0 %v4664_v17  ;;  %v7365_v38 = vld [vmem:[#allocation32_spill] sm:$0xff]  ;;  %v7370_v19 = vld [vmem:[#allocation37_spill] sm:$0xff] }
 0x1fe   : > { %4197 = vmatprep.mubr.bf16.mxu1 %v4666_v54  ;;  %v1920_v32 = vpop.f32.mrf.mxu0  ;;  %v1816_v13 = vadd.f32 %v7366_v29, %v7365_v38  ;;  %v7369_v60 = vld [vmem:[#allocation36_spill] sm:$0xff]  ;;  %v7375_v38 = vld [vmem:[#allocation42_spill] sm:$0xff]  ;;  %v7376_v29 = vld [vmem:[#allocation43_spill] sm:$0xff] }
 0x1ff   : > { %v7014_v37 = vpop.f32.mrf.mxu1  ;;  %2268 = vst [vmem:[%s6843_s29 + $0xf0] sm:$0xff] %v1919_v61  ;;  %v1921_v48 = vadd.f32 %v1920_v32, %v1808_v55  ;;  %v1820_v36 = vadd.f32 %v7370_v19, %v7369_v60  ;;  %v4679_v32 = vcombine.low %v2340_v10, %v2348_v26  ;;  %v7372_v10 = vld [vmem:[#allocation39_spill] sm:$0xff]  ;;  %v7373_v26 = vld [vmem:[#allocation40_spill] sm:$0xff] }
 0x200   : > { %v1922_v40 = vpop.f32.mrf.mxu0  ;;  %v1828_v15 = vadd.f32 %v7373_v26, %v7372_v10  ;;  %v7377_v60 = vld [vmem:[#allocation44_spill] sm:$0xff] }
 0x201   : > { %v7022_v27 = vpop.f32.mrf.mxu1  ;;  %2269 = vst [vmem:[%s6843_s29 + $0xf8] sm:$0xff] %v1921_v48  ;;  %v1923_v51 = vadd.f32 %v1922_v40, %v1810_v43  ;;  %v4834_v19 = vadd.f32 %v6837_v52, %v7377_v60 }
 0x202   : > { %v1924_v56 = vpop.f32.mrf.mxu0 }
 0x203   : > { %v7027_v7 = vpop.f32.mrf.mxu1  ;;  %2271 = vst [vmem:[%s6843_s29 + $0x108] sm:$0xff] %v1923_v51  ;;  %v1925_v17 = vadd.f32 %v1924_v56, %v1812_v8 }
 0x204   : > { %v1928_v54 = vpop.f32.mrf.mxu0  ;;  %4133 = vmatmul.mubr.bf16.gmra.mxu0 %v4663_v58  ;;  %v7371_v58 = vld [vmem:[#allocation38_spill] sm:$0xff] }
 0x205   : > { %v7032_v53 = vpop.f32.mrf.mxu1  ;;  %4198 = vmatmul.mubr.bf16.gmra.mxu1 %v4665_v50  ;;  %2272 = vst [vmem:[%s6843_s29 + $0x110] sm:$0xff] %v1925_v17  ;;  %v1929_v5 = vadd.f32 %v1928_v54, %v1816_v13  ;;  %4140 = vmatprep.mubr.bf16.mxu0 %v4680_v6  ;;  %v1826_v50 = vadd.f32 %v7371_v58, %v6798_v41  ;;  %v7374_v41 = vld [vmem:[#allocation41_spill] sm:$0xff] }
 0x206   : > { %4205 = vmatprep.mubr.bf16.mxu1 %v4682_v35  ;;  %v1930_v16 = vpop.f32.mrf.mxu0  ;;  %v1830_v51 = vadd.f32 %v7374_v41, %v6809_v59  ;;  %v1832_v13 = vadd.f32 %v7376_v29, %v7375_v38  ;;  %v4843_v29 = vadd.f32 %v6907_v34, %v6889_v21 }
 0x207   : > { %v7037_v23 = vpop.f32.mrf.mxu1  ;;  %2274 = vst [vmem:[%s6843_s29 + $0x120] sm:$0xff] %v1929_v5  ;;  %v1931_v49 = vadd.f32 %v1930_v16, %v1818_v14 }
 0x208   : > { %v1932_v55 = vpop.f32.mrf.mxu0 }
 0x209   : > { %v7042_v61 = vpop.f32.mrf.mxu1  ;;  %2275 = vst [vmem:[%s6843_s29 + $0x128] sm:$0xff] %v1931_v49  ;;  %v1933_v43 = vadd.f32 %v1932_v55, %v1820_v36 }
 0x20a   : > { %v1934_v48 = vpop.f32.mrf.mxu0 }
 0x20b   : > { %v7047_v40 = vpop.f32.mrf.mxu1  ;;  %2277 = vst [vmem:[%s6843_s29 + $0x138] sm:$0xff] %v1933_v43  ;;  %v1935_v45 = vadd.f32 %v1934_v48, %v1822_v9  ;;  %v4837_v48 = vadd.f32 %v6867_v39, %v6849_v31 }
 0x20c   : > { %v1938_v47 = vpop.f32.mrf.mxu0  ;;  %4141 = vmatmul.mubr.bf16.gmra.mxu0 %v4679_v32 }
 0x20d   : > { %v7052_v8 = vpop.f32.mrf.mxu1  ;;  %4206 = vmatmul.mubr.bf16.gmra.mxu1 %v4681_v2  ;;  %2278 = vst [vmem:[%s6843_s29 + $0x140] sm:$0xff] %v1935_v45  ;;  %v1939_v20 = vadd.f32 %v1938_v47, %v1826_v50 }
 0x20e   : > { %v1940_v44 = vpop.f32.mrf.mxu0 }
 0x20f   : > { %v7057_v30 = vpop.f32.mrf.mxu1  ;;  %2280 = vst [vmem:[%s6843_s29 + $0x150] sm:$0xff] %v1939_v20  ;;  %v1941_v6 = vadd.f32 %v1940_v44, %v1828_v15  ;;  %v4840_v20 = vadd.f32 %v6881_v42, %v6876_v18 }
 0x210   : > { %v1942_v35 = vpop.f32.mrf.mxu0 }
 0x211   : > { %v7062_v56 = vpop.f32.mrf.mxu1  ;;  %2281 = vst [vmem:[%s6843_s29 + $0x158] sm:$0xff] %v1941_v6  ;;  %v1943_v17 = vadd.f32 %v1942_v35, %v1830_v51 }
 0x212   : > { %v1944_v54 = vpop.f32.mrf.mxu0 }
 0x213   : > { %v7067_v46 = vpop.f32.mrf.mxu1  ;;  %2283 = vst [vmem:[%s6843_s29 + $0x168] sm:$0xff] %v1943_v17  ;;  %v1945_v28 = vadd.f32 %v1944_v54, %v1832_v13 }
 0x214   : > { %v4896_v14 = vpop.f32.mrf.mxu0 }
 0x215   : > { %v4960_v5 = vpop.f32.mrf.mxu1  ;;  %2284 = vst [vmem:[%s6843_s29 + $0x170] sm:$0xff] %v1945_v28 }
 0x216   : > { %v4897_v59 = vpop.f32.mrf.mxu0 }
 0x217   : > { %v4961_v16 = vpop.f32.mrf.mxu1  ;;  %v4898_v36 = vadd.f32 %v4897_v59, %v4896_v14  ;;  %v4846_v59 = vadd.f32 %v6921_v24, %v6916_v0 }
 0x218   : > { %v4899_v49 = vpop.f32.mrf.mxu0  ;;  %v4962_v2 = vadd.f32 %v4961_v16, %v4960_v5 }
 0x219   : > { %v4963_v55 = vpop.f32.mrf.mxu1  ;;  %v2079_v32 = vadd.f32 %v4898_v36, %v4834_v19 }
 0x21a   : > { %v4900_v9 = vpop.f32.mrf.mxu0 }
 0x21b   : > { %v4964_v43 = vpop.f32.mrf.mxu1  ;;  %v2176_v58 = vadd.f32 %v4962_v2, %v2079_v32  ;;  %v4901_v50 = vadd.f32 %v4900_v9, %v4899_v49  ;;  %v4849_v32 = vadd.f32 %v6945_v33, %v6929_v4 }
 0x21c   : > { %v4902_v45 = vpop.f32.mrf.mxu0  ;;  %v4965_v26 = vadd.f32 %v4964_v43, %v4963_v55 }
 0x21d   : > { %v4966_v47 = vpop.f32.mrf.mxu1  ;;  %2240 = vst [vmem:[%s6843_s29 + $0x10] sm:$0xff] %v2176_v58  ;;  %v2082_v10 = vadd.f32 %v4901_v50, %v4837_v48 }
 0x21e   : > { %v4903_v15 = vpop.f32.mrf.mxu0 }
 0x21f   : > { %v4967_v52 = vpop.f32.mrf.mxu1  ;;  %v2179_v44 = vadd.f32 %v4965_v26, %v2082_v10  ;;  %v4904_v41 = vadd.f32 %v4903_v15, %v4902_v45  ;;  %v4852_v45 = vadd.f32 %v6961_v3, %v6953_v22 }
 0x220   : > { %v4905_v51 = vpop.f32.mrf.mxu0  ;;  %v4968_v31 = vadd.f32 %v4967_v52, %v4966_v47 }
 0x221   : > { %v4969_v6 = vpop.f32.mrf.mxu1  ;;  %2243 = vst [vmem:[%s6843_s29 + $0x28] sm:$0xff] %v2179_v44  ;;  %v2087_v35 = vadd.f32 %v4904_v41, %v4840_v20  ;;  %v4855_v44 = vadd.f32 %v6978_v11, %v6971_v63 }
 0x222   : > { %v4906_v39 = vpop.f32.mrf.mxu0 }
 0x223   : > { %v4970_v38 = vpop.f32.mrf.mxu1  ;;  %v2184_v13 = vadd.f32 %v4968_v31, %v2087_v35  ;;  %v4907_v17 = vadd.f32 %v4906_v39, %v4905_v51 }
 0x224   : > { %v4908_v54 = vpop.f32.mrf.mxu0  ;;  %v4971_v18 = vadd.f32 %v4970_v38, %v4969_v6  ;;  %v4858_v38 = vadd.f32 %v6989_v1, %v6983_v57 }
 0x225   : > { %v4972_v28 = vpop.f32.mrf.mxu1  ;;  %2246 = vst [vmem:[%s6843_s29 + $0x40] sm:$0xff] %v2184_v13  ;;  %v2090_v14 = vadd.f32 %v4907_v17, %v4843_v29 }
 0x226   : > { %v4909_v42 = vpop.f32.mrf.mxu0 }
 0x227   : > { %v4973_v5 = vpop.f32.mrf.mxu1  ;;  %v2187_v16 = vadd.f32 %v4971_v18, %v2090_v14  ;;  %v4910_v60 = vadd.f32 %v4909_v42, %v4908_v54  ;;  %v4861_v18 = vadd.f32 %v7003_v12, %v6997_v25 }
 0x228   : > { %v4911_v19 = vpop.f32.mrf.mxu0  ;;  %v4974_v21 = vadd.f32 %v4973_v5, %v4972_v28 }
 0x229   : > { %v4975_v36 = vpop.f32.mrf.mxu1  ;;  %2249 = vst [vmem:[%s6843_s29 + $0x58] sm:$0xff] %v2187_v16  ;;  %v2095_v49 = vadd.f32 %v4910_v60, %v4846_v59 }
 0x22a   : > { %v4912_v34 = vpop.f32.mrf.mxu0 }
 0x22b   : > { %v4976_v55 = vpop.f32.mrf.mxu1  ;;  %v2192_v2 = vadd.f32 %v4974_v21, %v2095_v49  ;;  %v4913_v9 = vadd.f32 %v4912_v34, %v4911_v19 }
 0x22c   : > { %v4914_v43 = vpop.f32.mrf.mxu0  ;;  %v4977_v0 = vadd.f32 %v4976_v55, %v4975_v36  ;;  %v4864_v36 = vadd.f32 %v7014_v37, %v7008_v62 }
 0x22d   : > { %v4978_v48 = vpop.f32.mrf.mxu1  ;;  %2252 = vst [vmem:[%s6843_s29 + $0x70] sm:$0xff] %v2192_v2  ;;  %v2098_v58 = vadd.f32 %v4913_v9, %v4849_v32  ;;  %v4867_v9 = vadd.f32 %v7027_v7, %v7022_v27 }
 0x22e   : > { %v4915_v24 = vpop.f32.mrf.mxu0 }
 0x22f   : > { %v4979_v50 = vpop.f32.mrf.mxu1  ;;  %v2195_v47 = vadd.f32 %v4977_v0, %v2098_v58  ;;  %v4916_v10 = vadd.f32 %v4915_v24, %v4914_v43 }
 0x230   : > { %v4917_v26 = vpop.f32.mrf.mxu0  ;;  %v4980_v4 = vadd.f32 %v4979_v50, %v4978_v48 }
 0x231   : > { %v4981_v15 = vpop.f32.mrf.mxu1  ;;  %2255 = vst [vmem:[%s6843_s29 + $0x88] sm:$0xff] %v2195_v47  ;;  %v2103_v52 = vadd.f32 %v4916_v10, %v4852_v45  ;;  %v4870_v45 = vadd.f32 %v7037_v23, %v7032_v53 }
 0x232   : > { %v4918_v33 = vpop.f32.mrf.mxu0 }
 0x233   : > { %v4982_v20 = vpop.f32.mrf.mxu1  ;;  %v2200_v41 = vadd.f32 %v4980_v4, %v2103_v52  ;;  %v4919_v51 = vadd.f32 %v4918_v33, %v4917_v26  ;;  %v4873_v33 = vadd.f32 %v7047_v40, %v7042_v61 }
 0x234   : > { %v4920_v6 = vpop.f32.mrf.mxu0  ;;  %v4983_v22 = vadd.f32 %v4982_v20, %v4981_v15 }
 0x235   : > { %v4984_v35 = vpop.f32.mrf.mxu1  ;;  %2258 = vst [vmem:[%s6843_s29 + $0xa0] sm:$0xff] %v2200_v41  ;;  %v2106_v31 = vadd.f32 %v4919_v51, %v4855_v44 }
 0x236   : > { %v4921_v3 = vpop.f32.mrf.mxu0 }
 0x237   : > { %v4985_v39 = vpop.f32.mrf.mxu1  ;;  %v2203_v29 = vadd.f32 %v4983_v22, %v2106_v31  ;;  %v4922_v13 = vadd.f32 %v4921_v3, %v4920_v6  ;;  %v4876_v31 = vadd.f32 %v7057_v30, %v7052_v8 }
 0x238   : > { %v4923_v17 = vpop.f32.mrf.mxu0  ;;  %v4986_v63 = vadd.f32 %v4985_v39, %v4984_v35 }
 0x239   : > { %v4987_v54 = vpop.f32.mrf.mxu1  ;;  %2261 = vst [vmem:[%s6843_s29 + $0xb8] sm:$0xff] %v2203_v29  ;;  %v2111_v28 = vadd.f32 %v4922_v13, %v4858_v38 }
 0x23a   : > { %v4924_v11 = vpop.f32.mrf.mxu0 }
 0x23b   : > { %v4988_v14 = vpop.f32.mrf.mxu1  ;;  %v2208_v42 = vadd.f32 %v4986_v63, %v2111_v28  ;;  %v4925_v5 = vadd.f32 %v4924_v11, %v4923_v17  ;;  %v4879_v17 = vadd.f32 %v7067_v46, %v7062_v56 }
 0x23c   : > { %v4926_v59 = vpop.f32.mrf.mxu0  ;;  %v4989_v57 = vadd.f32 %v4988_v14, %v4987_v54 }
 0x23d   : > { %v4990_v16 = vpop.f32.mrf.mxu1  ;;  %2264 = vst [vmem:[%s6843_s29 + $0xd0] sm:$0xff] %v2208_v42  ;;  %v2114_v60 = vadd.f32 %v4925_v5, %v4861_v18 }
 0x23e   : > { %v4927_v1 = vpop.f32.mrf.mxu0 }
 0x23f   : > { %v4991_v19 = vpop.f32.mrf.mxu1  ;;  %v2211_v49 = vadd.f32 %v4989_v57, %v2114_v60  ;;  %v4928_v21 = vadd.f32 %v4927_v1, %v4926_v59 }
 0x240   : > { %v4929_v34 = vpop.f32.mrf.mxu0  ;;  %v4992_v25 = vadd.f32 %v4991_v19, %v4990_v16 }
 0x241   : > { %v4993_v55 = vpop.f32.mrf.mxu1  ;;  %2267 = vst [vmem:[%s6843_s29 + $0xe8] sm:$0xff] %v2211_v49  ;;  %v2119_v32 = vadd.f32 %v4928_v21, %v4864_v36 }
 0x242   : > { %v4930_v12 = vpop.f32.mrf.mxu0 }
 0x243   : > { %v4994_v2 = vpop.f32.mrf.mxu1  ;;  %v2216_v43 = vadd.f32 %v4992_v25, %v2119_v32  ;;  %v4931_v48 = vadd.f32 %v4930_v12, %v4929_v34 }
 0x244   : > { %v4932_v58 = vpop.f32.mrf.mxu0  ;;  %v4995_v62 = vadd.f32 %v4994_v2, %v4993_v55 }
 0x245   : > { %v4996_v0 = vpop.f32.mrf.mxu1  ;;  %2270 = vst [vmem:[%s6843_s29 + $0x100] sm:$0xff] %v2216_v43  ;;  %v2122_v24 = vadd.f32 %v4931_v48, %v4867_v9 }
 0x246   : > { %v4933_v37 = vpop.f32.mrf.mxu0 }
 0x247   : > { %v4997_v50 = vpop.f32.mrf.mxu1  ;;  %v2219_v47 = vadd.f32 %v4995_v62, %v2122_v24  ;;  %v4934_v10 = vadd.f32 %v4933_v37, %v4932_v58 }
 0x248   : > { %v4935_v26 = vpop.f32.mrf.mxu0  ;;  %v4998_v27 = vadd.f32 %v4997_v50, %v4996_v0 }
 0x249   : > { %v4999_v15 = vpop.f32.mrf.mxu1  ;;  %2273 = vst [vmem:[%s6843_s29 + $0x118] sm:$0xff] %v2219_v47  ;;  %v2127_v52 = vadd.f32 %v4934_v10, %v4870_v45 }
 0x24a   : > { %v4936_v7 = vpop.f32.mrf.mxu0 }
 0x24b   : > { %v5000_v4 = vpop.f32.mrf.mxu1  ;;  %v2224_v20 = vadd.f32 %v4998_v27, %v2127_v52  ;;  %v4937_v44 = vadd.f32 %v4936_v7, %v4935_v26 }
 0x24c   : > { %v4938_v41 = vpop.f32.mrf.mxu0  ;;  %v5001_v53 = vadd.f32 %v5000_v4, %v4999_v15 }
 0x24d   : > { %v5002_v51 = vpop.f32.mrf.mxu1  ;;  %2276 = vst [vmem:[%s6843_s29 + $0x130] sm:$0xff] %v2224_v20  ;;  %v2130_v6 = vadd.f32 %v4937_v44, %v4873_v33 }
 0x24e   : > { %v4939_v23 = vpop.f32.mrf.mxu0 }
 0x24f   : > { %v5003_v35 = vpop.f32.mrf.mxu1  ;;  %v2227_v22 = vadd.f32 %v5001_v53, %v2130_v6  ;;  %v4940_v3 = vadd.f32 %v4939_v23, %v4938_v41 }
 0x250   : > { %v4941_v39 = vpop.f32.mrf.mxu0  ;;  %v5004_v61 = vadd.f32 %v5003_v35, %v5002_v51 }
 0x251   : > { %v5005_v38 = vpop.f32.mrf.mxu1  ;;  %2279 = vst [vmem:[%s6843_s29 + $0x148] sm:$0xff] %v2227_v22  ;;  %v2135_v29 = vadd.f32 %v4940_v3, %v4876_v31 }
 0x252   : > { %v4942_v40 = vpop.f32.mrf.mxu0 }
 0x253   : > { %v5006_v13 = vpop.f32.mrf.mxu1  ;;  %v2232_v54 = vadd.f32 %v5004_v61, %v2135_v29  ;;  %v4943_v28 = vadd.f32 %v4942_v40, %v4941_v39 }
 0x254   : > { %v5024_v63 = vpop.f32.mrf.mxu0  ;;  %v5007_v8 = vadd.f32 %v5006_v13, %v5005_v38 }
 0x255   : > { %v5064_v11 = vpop.f32.mrf.mxu1  ;;  %2282 = vst [vmem:[%s6843_s29 + $0x160] sm:$0xff] %v2232_v54  ;;  %v2138_v14 = vadd.f32 %v4943_v28, %v4879_v17 }
 0x256   : > { %v5025_v30 = vpop.f32.mrf.mxu0 }
 0x257   : > { %v5065_v18 = vpop.f32.mrf.mxu1  ;;  %v2235_v42 = vadd.f32 %v5007_v8, %v2138_v14  ;;  %v5026_v5 = vadd.f32 %v5025_v30, %v5024_v63 }
 0x258   : > { %v5066_v59 = vadd.f32 %v5065_v18, %v5064_v11  ;;  %v5027_v16 = vpop.f32.mrf.mxu0 }
 0x259   : > { %v5067_v60 = vpop.f32.mrf.mxu1  ;;  %2285 = vst [vmem:[%s6843_s29 + $0x178] sm:$0xff] %v2235_v42 }
 0x25a   : > { %v7119_v57 = vadd.f32 %v5066_v59, %v5026_v5  ;;  %v5028_v1 = vpop.f32.mrf.mxu0 }
 0x25b   : > { %v5068_v19 = vpop.f32.mrf.mxu1  ;;  %v5029_v56 = vadd.f32 %v5028_v1, %v5027_v16 }
 0x25c   : > { %v5069_v46 = vadd.f32 %v5068_v19, %v5067_v60  ;;  %v5030_v36 = vpop.f32.mrf.mxu0 }
 0x25d   : > { %v5070_v49 = vpop.f32.mrf.mxu1 }
 0x25e   : > { %v7121_v21 = vadd.f32 %v5069_v46, %v5029_v56  ;;  %v5031_v34 = vpop.f32.mrf.mxu0 }
 0x25f   : > { %v5071_v55 = vpop.f32.mrf.mxu1  ;;  %v5032_v32 = vadd.f32 %v5031_v34, %v5030_v36 }
 0x260   : > { %v5072_v25 = vadd.f32 %v5071_v55, %v5070_v49  ;;  %v5033_v12 = vpop.f32.mrf.mxu0 }
 0x261   : > { %v5073_v2 = vpop.f32.mrf.mxu1 }
 0x262   : > { %v7123_v9 = vadd.f32 %v5072_v25, %v5032_v32  ;;  %v5034_v43 = vpop.f32.mrf.mxu0 }
 0x263   : > { %v5074_v48 = vpop.f32.mrf.mxu1  ;;  %v5035_v58 = vadd.f32 %v5034_v43, %v5033_v12 }
 0x264   : > { %v5075_v0 = vadd.f32 %v5074_v48, %v5073_v2  ;;  %v5036_v24 = vpop.f32.mrf.mxu0 }
 0x265   : > { %v5076_v62 = vpop.f32.mrf.mxu1 }
 0x266   : > { %v7125_v37 = vadd.f32 %v5075_v0, %v5035_v58  ;;  %v5037_v50 = vpop.f32.mrf.mxu0 }
 0x267   : > { %v5077_v45 = vpop.f32.mrf.mxu1  ;;  %v5038_v47 = vadd.f32 %v5037_v50, %v5036_v24 }
 0x268   : > { %v5078_v10 = vadd.f32 %v5077_v45, %v5076_v62  ;;  %v5039_v26 = vpop.f32.mrf.mxu0 }
 0x269   : > { %v5079_v15 = vpop.f32.mrf.mxu1 }
 0x26a   : > { %v7129_v52 = vadd.f32 %v5078_v10, %v5038_v47  ;;  %v5040_v27 = vpop.f32.mrf.mxu0 }
 0x26b   : > { %v5080_v7 = vpop.f32.mrf.mxu1  ;;  %v5041_v4 = vadd.f32 %v5040_v27, %v5039_v26 }
 0x26c   : > { %v5081_v33 = vadd.f32 %v5080_v7, %v5079_v15 }
 0x26d   : > { %5972 = shalt.err (!%p5969_p5)
}
 0x26e   : > { %s5973_s11 = scalar_lea.hbm %s7134_s8, 6144  ;;  %s5977_s10 = scalar_lea.hbm %s7303_s5, 12288 }
 0x26f   : > { %p5974_p9 = scmp.ne.s32.totalorder %s7134_s8, %s5973_s11  ;;  %p5978_p3 = scmp.lt.s32.totalorder %s7134_s8, %s7303_s5 }
 0x270   : > { %p5979_p1 = scmp.lt.s32.totalorder %s5977_s10, %s5973_s11 }
 0x271   : > { %p5975_p2 = pnand %p5974_p9, %p7378_p12 }
 0x272   : > { %p5980_p11 = por %p5979_p1, %p5978_p3 }
 0x273   : > { %p5976_p0 = pneg %p5975_p2 }
 0x275   : > { %p5981_p6 = pnand %p5980_p11, %p5976_p0 }
 0x277   : > { %5984 = shalt.err (!%p5981_p6)
}
 0x278   : > { %s6084_s0 = smov 384   ;;  %s6085_s23 = smov 24   ;;  %v5042_v20 = vpop.f32.mrf.mxu0  ;;  %v5082_v44 = vpop.f32.mrf.mxu1  ;;  %v7161_v41 = vadd.f32 %v5081_v33, %v5041_v4 }
 0x279   : > { %5349 = dma.vmem_to_hbm [thread:$0]  (%p7378_p12), %s7136_s16, 6144, %s7134_s8, %s4232_s15, %s6084_s0, %s6084_s0, %s6085_s23  }
 0x27a   : > { %v5043_v51 = vpop.f32.mrf.mxu0  ;;  %v5083_v6 = vpop.f32.mrf.mxu1  ;;  %s4812_s27 = sshll.u32 %s6143_s25, 4  ;;  %s358_s29 = scalar_lea.vmem [#allocation12], %s6302_s13 }
 0x27b   : > { %v5044_v53 = vadd.f32 %v5043_v51, %v5042_v20  ;;  %v5084_v23 = vadd.f32 %v5083_v6, %v5082_v44  ;;  %s4265_s12 = sshll.u32 %s358_s29, 4  ;;  %s4263_s9 = scalar_lea.hbm %s7304_s6, %s4812_s27  ;;  %s4266_s12 = int_to_ptr.vmem [resolvable:$true] %s4265_s12 }
 0x27c   : > { %v5045_v35 = vpop.f32.mrf.mxu0  ;;  %v5085_v31 = vpop.f32.mrf.mxu1  ;;  %s4237_s8 = scalar_lea.sflag [#allocation13], %s6302_s13  ;;  %s5985_s15 = scalar_lea.vmem %s4266_s12, 16 }
 0x27d   : > { %v7163_v22 = vadd.f32 %v5084_v23, %v5044_v53  ;;  %p5986_p4 = scmp.ne.s32.totalorder %s4266_s12, %s5985_s15  ;;  %s6086_s14 = smov [#allocation12]  }
 0x27e   : > { %v5046_v3 = vpop.f32.mrf.mxu0  ;;  %v5086_v39 = vpop.f32.mrf.mxu1  ;;  %s5989_s30 = sshll.u32 %s6086_s14, 4  ;;  %s5990_s30 = int_to_ptr.vmem [resolvable:$false] %s5989_s30 }
 0x27f   : > { %v5047_v38 = vadd.f32 %v5046_v3, %v5045_v35  ;;  %v5087_v29 = vadd.f32 %v5086_v39, %v5085_v31  ;;  %p5987_p8 = pnand %p5986_p4, %p7378_p12  ;;  %s5991_s25 = scalar_lea.vmem %s5990_s30, 32 }
 0x280   : > { %v5104_v61 = vpop.f32.mrf.mxu0  ;;  %v5144_v40 = vpop.f32.mrf.mxu1  ;;  %p5992_p10 = scmp.lt.s32.totalorder %s4266_s12, %s5990_s30  ;;  %p5993_p13 = scmp.lt.s32.totalorder %s5991_s25, %s5985_s15 }
 0x281   : > { %v7165_v13 = vadd.f32 %v5087_v29, %v5047_v38  ;;  %p5988_p7 = pneg %p5987_p8 }
 0x282   : > { %v5105_v17 = vpop.f32.mrf.mxu0  ;;  %v5145_v54 = vpop.f32.mrf.mxu1  ;;  %p5994_p5 = por %p5993_p13, %p5992_p10 }
 0x283   : > { %v5106_v28 = vadd.f32 %v5105_v17, %v5104_v61  ;;  %v5146_v63 = vadd.f32 %v5145_v54, %v5144_v40 }
 0x284   : > { %v5107_v11 = vpop.f32.mrf.mxu0  ;;  %v5147_v14 = vpop.f32.mrf.mxu1  ;;  %p5995_p9 = pnand %p5994_p5, %p5988_p7 }
 0x285   : > { %v3859_v8 = vadd.f32 %v5106_v28, %v7119_v57 }
 0x286   : > { %v5108_v30 = vpop.f32.mrf.mxu0  ;;  %v5148_v18 = vpop.f32.mrf.mxu1 }
 0x287   : > { %v7168_v42 = vadd.f32 %v5146_v63, %v3859_v8  ;;  %v5109_v5 = vadd.f32 %v5108_v30, %v5107_v11  ;;  %v5149_v59 = vadd.f32 %v5148_v18, %v5147_v14 }
 0x288   : > { %v5110_v16 = vpop.f32.mrf.mxu0  ;;  %v5150_v60 = vpop.f32.mrf.mxu1 }
 0x289   : > { %v3862_v1 = vadd.f32 %v5109_v5, %v7121_v21 }
 0x28a   : > { %v5111_v19 = vpop.f32.mrf.mxu0  ;;  %v5151_v56 = vpop.f32.mrf.mxu1 }
 0x28b   : > { %v7171_v46 = vadd.f32 %v5149_v59, %v3862_v1  ;;  %v5112_v36 = vadd.f32 %v5111_v19, %v5110_v16  ;;  %v5152_v49 = vadd.f32 %v5151_v56, %v5150_v60 }
 0x28c   : > { %v5113_v34 = vpop.f32.mrf.mxu0  ;;  %v5153_v55 = vpop.f32.mrf.mxu1 }
 0x28d   : > { %v3867_v57 = vadd.f32 %v5112_v36, %v7123_v9 }
 0x28e   : > { %v5114_v32 = vpop.f32.mrf.mxu0  ;;  %v5154_v25 = vpop.f32.mrf.mxu1 }
 0x28f   : > { %v7174_v12 = vadd.f32 %v5152_v49, %v3867_v57  ;;  %v5115_v2 = vadd.f32 %v5114_v32, %v5113_v34  ;;  %v5155_v43 = vadd.f32 %v5154_v25, %v5153_v55 }
 0x290   : > { %v5116_v48 = vpop.f32.mrf.mxu0  ;;  %v5156_v58 = vpop.f32.mrf.mxu1 }
 0x291   : > { %v3870_v21 = vadd.f32 %v5115_v2, %v7125_v37 }
 0x292   : > { %v5117_v0 = vpop.f32.mrf.mxu0  ;;  %v5157_v24 = vpop.f32.mrf.mxu1 }
 0x293   : > { %v7177_v62 = vadd.f32 %v5155_v43, %v3870_v21  ;;  %v5118_v50 = vadd.f32 %v5117_v0, %v5116_v48  ;;  %v5158_v10 = vadd.f32 %v5157_v24, %v5156_v58 }
 0x294   : > { %v7179_v45 = vpop.f32.mrf.mxu0  ;;  %v7181_v47 = vpop.f32.mrf.mxu1 }
 0x295   : > { %v3875_v9 = vadd.f32 %v5118_v50, %v7129_v52 }
 0x296   : > { %v7184_v26 = vpop.f32.mrf.mxu0  ;;  %v7186_v15 = vpop.f32.mrf.mxu1 }
 0x297   : > { %v7188_v27 = vadd.f32 %v5158_v10, %v3875_v9 }
 0x298   : > { %v7190_v7 = vpop.f32.mrf.mxu0  ;;  %v7192_v37 = vpop.f32.mrf.mxu1 }
 0x29a   : > { %v7194_v4 = vpop.f32.mrf.mxu0  ;;  %v7196_v33 = vpop.f32.mrf.mxu1 }
 0x29c   : > { %v7198_v20 = vpop.f32.mrf.mxu0  ;;  %v7200_v44 = vpop.f32.mrf.mxu1 }
 0x29e   : > { %v7202_v52 = vpop.f32.mrf.mxu0  ;;  %v7204_v51 = vpop.f32.mrf.mxu1 }
 0x2a0   : > { %v5184_v6 = vpop.f32.mrf.mxu0  ;;  %v5224_v53 = vpop.f32.mrf.mxu1 }
 0x2a2   : > { %v5185_v23 = vpop.f32.mrf.mxu0  ;;  %v5225_v35 = vpop.f32.mrf.mxu1 }
 0x2a3   : > { %v5186_v55 = vadd.f32 %v5185_v23, %v5184_v6  ;;  %v5226_v24 = vadd.f32 %v5225_v35, %v5224_v53 }
 0x2a4   : > { %v5187_v31 = vpop.f32.mrf.mxu0  ;;  %v5227_v3 = vpop.f32.mrf.mxu1 }
 0x2a5   : > { %v3989_v48 = vadd.f32 %v5186_v55, %v7168_v42  ;;  %v5121_v42 = vadd.f32 %v7184_v26, %v7179_v45  ;;  %v5124_v45 = vadd.f32 %v7194_v4, %v7190_v7  ;;  %v5127_v4 = vadd.f32 %v7202_v52, %v7198_v20 }
 0x2a6   : > { %v5188_v39 = vpop.f32.mrf.mxu0  ;;  %v5228_v38 = vpop.f32.mrf.mxu1 }
 0x2a7   : > { %v5189_v25 = vadd.f32 %v5188_v39, %v5187_v31  ;;  %v5229_v6 = vadd.f32 %v5228_v38, %v5227_v3  ;;  %v3883_v7 = vadd.f32 %v5124_v45, %v7163_v22  ;;  %v3886_v52 = vadd.f32 %v5127_v4, %v7165_v13 }
 0x2a8   : > { %v5190_v29 = vpop.f32.mrf.mxu0  ;;  %v5230_v61 = vpop.f32.mrf.mxu1 }
 0x2a9   : > { %v3992_v50 = vadd.f32 %v5189_v25, %v7171_v46 }
 0x2aa   : > { %v5191_v40 = vpop.f32.mrf.mxu0  ;;  %v5231_v17 = vpop.f32.mrf.mxu1 }
 0x2ab   : > { %v5192_v58 = vadd.f32 %v5191_v40, %v5190_v29  ;;  %v4057_v39 = vadd.f32 %v5229_v6, %v3992_v50  ;;  %v5232_v29 = vadd.f32 %v5231_v17, %v5230_v61 }
 0x2ac   : > { %v5193_v54 = vpop.f32.mrf.mxu0  ;;  %v5233_v28 = vpop.f32.mrf.mxu1 }
 0x2ad   : > { %v3997_v23 = vadd.f32 %v5192_v58, %v7174_v12 }
 0x2ae   : > { %v5194_v63 = vpop.f32.mrf.mxu0  ;;  %v5234_v11 = vpop.f32.mrf.mxu1 }
 0x2af   : > { %v4062_v25 = vadd.f32 %v5232_v29, %v3997_v23  ;;  %v5235_v17 = vadd.f32 %v5234_v11, %v5233_v28 }
 0x2b0   : > { %v5196_v14 = vpop.f32.mrf.mxu0  ;;  %v7206_v8 = vpop.f32.mrf.mxu1 }
 0x2b2   : > { %v5197_v30 = vpop.f32.mrf.mxu0  ;;  %v7208_v18 = vpop.f32.mrf.mxu1 }
 0x2b4   : > { %v5199_v5 = vpop.f32.mrf.mxu0  ;;  %v7210_v59 = vpop.f32.mrf.mxu1 }
 0x2b6   : > { %v5200_v16 = vpop.f32.mrf.mxu0  ;;  %v7212_v60 = vpop.f32.mrf.mxu1 }
 0x2b8   : > { %v7214_v1 = vpop.f32.mrf.mxu0  ;;  %v7216_v19 = vpop.f32.mrf.mxu1 }
 0x2b9   : > { %7379 = vst [vmem:[#allocation25_spill] sm:$0xff] %v7216_v19  ;;  %v5195_v19 = vadd.f32 %v5194_v63, %v5193_v54  ;;  %v5198_v54 = vadd.f32 %v5197_v30, %v5196_v14 }
 0x2ba   : > { %v7218_v56 = vpop.f32.mrf.mxu0  ;;  %v7220_v36 = vpop.f32.mrf.mxu1 }
 0x2bb   : > { %7380 = vst [vmem:[#allocation26_spill] sm:$0xff] %v7220_v36  ;;  %v4000_v3 = vadd.f32 %v5195_v19, %v7177_v62  ;;  %v5161_v62 = vadd.f32 %v7186_v15, %v7181_v47  ;;  %v5201_v19 = vadd.f32 %v5200_v16, %v5199_v5  ;;  %v5164_v16 = vadd.f32 %v7196_v33, %v7192_v37 }
 0x2bc   : > { %v7222_v49 = vpop.f32.mrf.mxu0  ;;  %v7224_v34 = vpop.f32.mrf.mxu1  ;;  %v5204_v22 = vadd.f32 %v7218_v56, %v7214_v1  ;;  %v5167_v33 = vadd.f32 %v7204_v51, %v7200_v44 }
 0x2bd   : > { %7381 = vst [vmem:[#allocation27_spill] sm:$0xff] %v7222_v49  ;;  %7382 = vst [vmem:[#allocation28_spill] sm:$0xff] %v7224_v34  ;;  %v4054_v34 = vadd.f32 %v5226_v24, %v3989_v48  ;;  %v4065_v30 = vadd.f32 %v5235_v17, %v4000_v3  ;;  %v3948_v23 = vadd.f32 %v5164_v16, %v3883_v7 }
 0x2be   : > { %v7226_v57 = vpop.f32.mrf.mxu0  ;;  %v7228_v32 = vpop.f32.mrf.mxu1 }
 0x2bf   : > { %7383 = vst [vmem:[#allocation29_spill] sm:$0xff] %v7226_v57  ;;  %7384 = vst [vmem:[#allocation30_spill] sm:$0xff] %v7228_v32  ;;  %v4013_v1 = vadd.f32 %v5204_v22, %v3948_v23 }
 0x2c0   : > { %v5264_v2 = vpop.f32.mrf.mxu0  ;;  %v5304_v43 = vpop.f32.mrf.mxu1 }
 0x2c2   : > { %v5265_v21 = vpop.f32.mrf.mxu0  ;;  %v5305_v0 = vpop.f32.mrf.mxu1  ;;  %v7388_v3 = vld [vmem:[#allocation26_spill] sm:$0xff] }
 0x2c3   : > { %v5266_v9 = vadd.f32 %v5265_v21, %v5264_v2  ;;  %v5306_v46 = vadd.f32 %v5305_v0, %v5304_v43  ;;  %v5238_v0 = vadd.f32 %v7208_v18, %v7206_v8  ;;  %v5241_v8 = vadd.f32 %v7212_v60, %v7210_v59 }
 0x2c4   : > { %v5267_v10 = vpop.f32.mrf.mxu0  ;;  %v5307_v36 = vpop.f32.mrf.mxu1  ;;  %v7385_v56 = vld [vmem:[#allocation27_spill] sm:$0xff]  ;;  %v7389_v17 = vld [vmem:[#allocation28_spill] sm:$0xff] }
 0x2c5   : > { %v4119_v57 = vadd.f32 %v5266_v9, %v4054_v34  ;;  %v3878_v34 = vadd.f32 %v5121_v42, %v7161_v41 }
 0x2c6   : > { %v5268_v32 = vpop.f32.mrf.mxu0  ;;  %v5308_v31 = vpop.f32.mrf.mxu1 }
 0x2c7   : > { %v5269_v49 = vadd.f32 %v5268_v32, %v5267_v10  ;;  %v5309_v55 = vadd.f32 %v5308_v31, %v5307_v36  ;;  %v4184_v63 = vadd.f32 %v5306_v46, %v4119_v57  ;;  %v4005_v57 = vadd.f32 %v5198_v54, %v7188_v27 }
 0x2c8   : > { %v5270_v53 = vpop.f32.mrf.mxu0  ;;  %v5310_v35 = vpop.f32.mrf.mxu1  ;;  %v3943_v21 = vadd.f32 %v5161_v62, %v3878_v34 }
 0x2c9   : > { %v4122_v40 = vadd.f32 %v5269_v49, %v4057_v39  ;;  %v4070_v9 = vadd.f32 %v5238_v0, %v4005_v57 }
 0x2ca   : > { %v5271_v38 = vpop.f32.mrf.mxu0  ;;  %v5311_v12 = vpop.f32.mrf.mxu1  ;;  %v4008_v27 = vadd.f32 %v5201_v19, %v3943_v21 }
 0x2cb   : > { %v4187_v2 = vadd.f32 %v5309_v55, %v4122_v40  ;;  %v5272_v48 = vadd.f32 %v5271_v38, %v5270_v53  ;;  %v5312_v36 = vadd.f32 %v5311_v12, %v5310_v35  ;;  %v7386_v35 = vld [vmem:[#allocation29_spill] sm:$0xff]  ;;  %v3951_v55 = vadd.f32 %v5167_v33, %v3886_v52 }
 0x2cc   : > { %v5273_v26 = vpop.f32.mrf.mxu0  ;;  %v5313_v61 = vpop.f32.mrf.mxu1  ;;  %v4073_v42 = vadd.f32 %v5241_v8, %v4008_v27  ;;  %v5207_v46 = vadd.f32 %v7386_v35, %v7385_v56  ;;  %v4228_v27 = vld [vmem:[#allocation9] sm:$0x1] }
 0x2cd   : > { %v4214_v32 = vadd.f32 %v4187_v2, %v4184_v63  ;;  %v4127_v49 = vadd.f32 %v5272_v48, %v4062_v25  ;;  %v7387_v25 = vld [vmem:[#allocation25_spill] sm:$0xff] }
 0x2ce   : > { %v5274_v43 = vpop.f32.mrf.mxu0  ;;  %v5314_v14 = vpop.f32.mrf.mxu1  ;;  %v5244_v38 = vadd.f32 %v7388_v3, %v7387_v25  ;;  %v4016_v48 = vadd.f32 %v5207_v46, %v3951_v55 }
 0x2cf   : > { %v4192_v58 = vadd.f32 %v5312_v36, %v4127_v49  ;;  %v5275_v41 = vadd.f32 %v5274_v43, %v5273_v26  ;;  %v5315_v5 = vadd.f32 %v5314_v14, %v5313_v61 }
 0x2d0   : > { %v5276_v28 = vpop.f32.mrf.mxu0  ;;  %v5316_v11 = vpop.f32.mrf.mxu1  ;;  %v4078_v51 = vadd.f32 %v5244_v38, %v4013_v1 }
 0x2d1   : > { %v4215_v47 = vadd.f32 %v4214_v32, %v4192_v58  ;;  %v4130_v15 = vadd.f32 %v5275_v41, %v4065_v30  ;;  %v7390_v32 = vld [vmem:[#allocation30_spill] sm:$0xff] }
 0x2d2   : > { %v5277_v24 = vpop.f32.mrf.mxu0  ;;  %v5317_v50 = vpop.f32.mrf.mxu1  ;;  %v5247_v49 = vadd.f32 %v7390_v32, %v7389_v17 }
 0x2d3   : > { %v4195_v10 = vadd.f32 %v5315_v5, %v4130_v15  ;;  %v5278_v20 = vadd.f32 %v5277_v24, %v5276_v28  ;;  %v5318_v37 = vadd.f32 %v5317_v50, %v5316_v11 }
 0x2d4   : > { %v5279_v18 = vpop.f32.mrf.mxu0  ;;  %v5319_v6 = vpop.f32.mrf.mxu1  ;;  %v4081_v30 = vadd.f32 %v5247_v49, %v4016_v48 }
 0x2d5   : > { %v4216_v31 = vadd.f32 %v4215_v47, %v4195_v10  ;;  %v4135_v39 = vadd.f32 %v5278_v20, %v4070_v9 }
 0x2d6   : > { %v5280_v29 = vpop.f32.mrf.mxu0  ;;  %v5320_v53 = vpop.f32.mrf.mxu1 }
 0x2d7   : > { %v4200_v13 = vadd.f32 %v5318_v37, %v4135_v39  ;;  %v5281_v40 = vadd.f32 %v5280_v29, %v5279_v18  ;;  %v5321_v63 = vadd.f32 %v5320_v53, %v5319_v6 }
 0x2d8   : > { %v5282_v59 = vpop.f32.mrf.mxu0  ;;  %v5322_v60 = vpop.f32.mrf.mxu1 }
 0x2d9   : > { %v4217_v12 = vadd.f32 %v4216_v31, %v4200_v13  ;;  %v4138_v54 = vadd.f32 %v5281_v40, %v4073_v42 }
 0x2da   : > { %v5283_v2 = vpop.f32.mrf.mxu0  ;;  %v5323_v44 = vpop.f32.mrf.mxu1 }
 0x2db   : > { %v4203_v34 = vadd.f32 %v5321_v63, %v4138_v54  ;;  %v5284_v45 = vadd.f32 %v5283_v2, %v5282_v59  ;;  %v5324_v19 = vadd.f32 %v5323_v44, %v5322_v60 }
 0x2dc   : > { %v5285_v26 = vpop.f32.mrf.mxu0  ;;  %v5325_v61 = vpop.f32.mrf.mxu1 }
 0x2dd   : > { %v4218_v36 = vadd.f32 %v4217_v12, %v4203_v34  ;;  %v4143_v62 = vadd.f32 %v5284_v45, %v4078_v51 }
 0x2de   : > { %v5286_v43 = vpop.f32.mrf.mxu0  ;;  %v5326_v14 = vpop.f32.mrf.mxu1 }
 0x2df   : > { %v4208_v57 = vadd.f32 %v5324_v19, %v4143_v62  ;;  %v5287_v58 = vadd.f32 %v5286_v43, %v5285_v26  ;;  %v5327_v7 = vadd.f32 %v5326_v14, %v5325_v61 }
 0x2e1   : > { %v4219_v41 = vadd.f32 %v4218_v36, %v4208_v57  ;;  %v4146_v21 = vadd.f32 %v5287_v58, %v4081_v30 }
 0x2e3   : > { %v4211_v4 = vadd.f32 %v5327_v7, %v4146_v21 }
 0x2e5   : > { %v4220_v28 = vadd.f32 %v4219_v41, %v4211_v4 }
 0x2e7   : > { %v4221_v11 = vrot.slane %v4220_v28, 4 }
 0x2e9   : > { %v4222_v0 = vadd.f32 %v4221_v11, %v4220_v28 }
 0x2eb   : > { %v4223_v47 = vrot.slane %v4222_v0, 2 }
 0x2ed   : > { %v4224_v15 = vadd.f32 %v4223_v47, %v4222_v0 }
 0x2ef   : > { %v4225_v5 = vrot.slane %v4224_v15, 1 }
 0x2f1   : > { %v4226_v16 = vadd.f32 %v4225_v5, %v4224_v15 }
 0x2f3   : > { %v4227_v24 = vmul.f32 0.015625, %v4226_v16 }
 0x2f5   : > { %v4229_v50 = vadd.f32 %v4228_v27, %v4227_v24 }
 0x2f7   : > { %4230 = vst [vmem:[%s358_s29] sm:$0x1] %v4229_v50 }
 0x2f8   : > { %5998 = shalt.err (!%p5995_p9)
}
 0x2f9   : > { %s5999_s7 = scalar_lea.hbm %s4263_s9, 16  ;;  %s6003_s11 = scalar_lea.hbm %s7304_s6, 32 }
 0x2fa   : > { %p6000_p2 = scmp.ne.s32.totalorder %s4263_s9, %s5999_s7  ;;  %p6004_p1 = scmp.lt.s32.totalorder %s4263_s9, %s7304_s6 }
 0x2fb   : > { %p6005_p11 = scmp.lt.s32.totalorder %s6003_s11, %s5999_s7 }
 0x2fc   : > { %p6001_p0 = pnand %p6000_p2, %p7378_p12 }
 0x2fd   : > { %p6006_p6 = por %p6005_p11, %p6004_p1 }
 0x2fe   : > { %p6002_p3 = pneg %p6001_p0 }
 0x300   : > { %p6007_p4 = pnand %p6006_p6, %p6002_p3 }
 0x302   : > { %6010 = shalt.err (!%p6007_p4)
}
 0x303   : > { %5350 = dma.vmem_to_hbm [thread:$0]  (%p7378_p12), %s4266_s12, 16, %s4263_s9, %s4237_s8  }
 0x304 PF: > { %s7391_s10 = sld [smem:[#allocation22_spill]]  ;;  %s4277_s17 = sand.u32 1, %s6057_s21  }
 0x305   : > { %p7393_p7 = scmp.ge.s32.totalorder %s6069_s24, 2  ;;  %s4278_s28 = scalar_lea.sflag [#allocation4], %s4277_s17 }
 0x30a   : > { %p7392_p8 = scmp.ne.s32.totalorder %s7391_s10, 0 }
 0x30c   : > { %p5371_p10 = pnand %p7393_p7, %p7392_p8 }
 0x30e   : > { %p5372_p13 = pneg %p5371_p10 }
 0x310   : > { %6048 = dma.done.wait (%p5372_p13), %s4278_s28, 6144  }
 0x311   : > { %6050 = vsyncadd (%p5372_p13), %s4278_s28, 4294961152  ;;  %s4287_s0 = scalar_lea.sflag [#allocation13], %s4277_s17 }
 0x312   : > { %6052 = dma.done.wait (%p5372_p13), %s4287_s0, 16  }
 0x313   : > { %6054 = vsyncadd (%p5372_p13), %s4287_s0, 4294967280  ;;  %s7394_s24 = sld [smem:[#allocation23_spill]]  ;;  %s7397_s21 = smov %s6061_s22 }
 0x314   : > { %s7395_s23 = sld [smem:[#allocation21_spill]] }
 0x315   : > { %s7396_s18 = sld [smem:[#allocation24_spill]] }
 0x319   : > { %p25_p12 = scmp.ge.s32.totalorder %s7394_s24, 4  }
 0x31a   : > { %s7398_s22 = smov %s7395_s23 }
 0x31b   : > { %s7399_s23 = smov %s7396_s18  ;;  %27 = sbr.rel (!%p25_p12) target bundleno = 12 (0xc), region = 125 }
 0x320   :  { %4291 = vsyncpa [#allocation3], 1 }
 0x321   :  { %4293 = vsyncpa [#allocation3 + $0x1], 1 }
 0x322   :  { %4294 = vsyncpa [#allocation6], 1 }
 0x323   :  { %4295 = vsyncpa [#allocation10], 1 }
 0x324   :  { %4296 = vsyncpa [#allocation4], 1 }
 0x325   :  { %4298 = vsyncpa [#allocation4 + $0x1], 1 }
 0x326   :  { %4299 = vsyncpa [#allocation13], 1 }
 0x327   :  { %4301 = vsyncpa [#allocation13 + $0x1], 1 }

</bundles_post_ra>
